<compile_context>
chip_gen: v7x
topology: tpu7x:2x2x1
jax: 0.10.0
libtpu: 0.0.40
codegen_flags: <defaults>
</compile_context>

<pallas_src>
import functools
import math

import jax
import jax.numpy as jnp
from jax.experimental import pallas as pl
from jax.experimental.pallas import tpu as pltpu


def _rvq_kernel(x_ref, cb_ref, cbt_ref, cbsq_ref, qout_ref, codes_ref,
                res_ref, qacc_ref, *, idx_bits):
    """One residual-VQ stage for one [D, TT] channel-major tile per grid step."""
    q = pl.program_id(2)
    n_q = pl.num_programs(2)

    @pl.when(q == 0)
    def _init():
        res_ref[...] = x_ref[...].astype(jnp.float32)
        qacc_ref[...] = jnp.zeros(qacc_ref.shape, qacc_ref.dtype)

    r = res_ref[...]                                     # [D, TT] f32 residual

    # VMEM-resident codebooks; slice the current stage (dynamic leading-axis
    # index is a cheap contiguous offset, no re-DMA from HBM).
    cb_neg2 = cb_ref[q]                                  # [C, D] bf16, pre-scaled by -2
    cbt = cbt_ref[q]                                     # [D, C] bf16 (unscaled)
    cbsq = cbsq_ref[q]                                   # [C, 1] f32  ||e_c||^2

    # Distances up to the token-constant ||r||^2 term; bf16 MXU, f32 accumulate.
    dots = jnp.dot(cb_neg2, r.astype(jnp.bfloat16),
                   preferred_element_type=jnp.float32)   # [C, TT] = -2<e,r>
    scores = cbsq + dots                                 # [C, TT]

    # Single-pass packed argmin over the codebook (sublane) axis.
    # key: monotone int32 re-encoding of the f32 score; low idx_bits bits are
    # replaced by the row index, so one min yields value + argmin (first index
    # wins ties; tie-breaking changes only below the bf16-dot noise floor).
    bits = pltpu.bitcast(scores, jnp.int32)
    key = jnp.where(bits >= 0, bits, bits ^ jnp.int32(0x7FFFFFFF))
    row = jax.lax.broadcasted_iota(jnp.int32, scores.shape, 0)
    packed = (key & jnp.int32(-(1 << idx_bits))) | row              # [C, TT]
    pmin = jnp.min(packed, axis=0, keepdims=True)                   # [1, TT]
    idx = pmin & jnp.int32((1 << idx_bits) - 1)                     # [1, TT] int32
    codes_ref[pl.ds(q, 1), :] = idx            # lane-dense row for stage q

    # Codebook lookup as a one-hot matmul on the MXU (exact: single 1.0/column,
    # since every packed key carries a distinct row index).
    onehot = (packed == pmin).astype(jnp.bfloat16)                  # [C, TT]
    quant = jnp.dot(cbt, onehot, preferred_element_type=jnp.float32)  # [D, TT]

    res_ref[...] = r - quant
    qacc_ref[...] = qacc_ref[...] + quant

    @pl.when(q == n_q - 1)
    def _finish():
        qout_ref[...] = qacc_ref[...].astype(qout_ref.dtype)


def _rvq_pallas(x, cb_neg2_bf16, cbt_bf16, cb_sq, time_tile):
    """x: [B, D, T] (f32 or bf16), cb_neg2_bf16: [n_q, C, D] (= -2 * codebook),
    cbt_bf16: [n_q, D, C], cb_sq: [n_q, C, 1] f32.  T % time_tile == 0.
    Returns (quantized [B, D, T] x.dtype, codes [B, n_q, T] int32)."""
    B, D, T = x.shape
    n_q, C, _ = cb_neg2_bf16.shape
    assert T % time_tile == 0
    n_t = T // time_tile
    idx_bits = max(1, (C - 1).bit_length())

    n_steps = B * n_t * n_q
    flops = 4 * C * D * time_tile * n_steps                 # two matmuls / step
    x_bytes = x.dtype.itemsize
    bytes_accessed = (2 * B * D * T * x_bytes                # x in + quantized out
                      + B * n_q * T * 4                      # codes out
                      + 2 * n_q * C * D * 2                  # resident cb + cb^T (once)
                      + n_q * C * 4)                         # ||e_c||^2 (once)

    quant, codes = pl.pallas_call(
        functools.partial(_rvq_kernel, idx_bits=idx_bits),
        out_shape=(
            jax.ShapeDtypeStruct((B, D, T), x.dtype),
            jax.ShapeDtypeStruct((B, n_q, T), jnp.int32),
        ),
        grid_spec=pltpu.PrefetchScalarGridSpec(
            num_scalar_prefetch=0,
            grid=(B, n_t, n_q),
            in_specs=[
                # x tile (resident over q)
                pl.BlockSpec((None, D, time_tile), lambda b, t, q: (b, 0, t)),
                # Codebooks: full-array blocks, constant index_map => DMA'd into
                # VMEM once and kept resident for the whole kernel.
                pl.BlockSpec((n_q, C, D), lambda b, t, q: (0, 0, 0)),   # -2*codebook
                pl.BlockSpec((n_q, D, C), lambda b, t, q: (0, 0, 0)),   # codebook^T
                pl.BlockSpec((n_q, C, 1), lambda b, t, q: (0, 0, 0)),   # ||e_c||^2
            ],
            out_specs=[
                pl.BlockSpec((None, D, time_tile), lambda b, t, q: (b, 0, t)),    # quantized
                pl.BlockSpec((None, n_q, time_tile), lambda b, t, q: (b, 0, t)),  # codes
            ],
            scratch_shapes=[
                pltpu.VMEM((D, time_tile), jnp.float32),   # residual carry across q
                pltpu.VMEM((D, time_tile), jnp.float32),   # f32 quantized accumulator
            ],
        ),
        compiler_params=pltpu.CompilerParams(
            dimension_semantics=("parallel", "parallel", "arbitrary"),
            vmem_limit_bytes=48 * 1024 * 1024,
        ),
        cost_estimate=pl.CostEstimate(
            flops=flops, transcendentals=0, bytes_accessed=bytes_accessed),
    )(x, cb_neg2_bf16, cbt_bf16, cb_sq)
    return quant, codes


class ResidualVectorQuantizerPallas:
    """JAX/Pallas equivalent of encodec.quantization.vq.ResiualVectorQuantizer
    (eval-mode forward)."""

    def __init__(self, n_q=8, dim=128, codebook_size=1024, seed=0,
                 codebook_scale=1.0, time_tile=512):
        assert time_tile % 128 == 0, "time_tile must be a multiple of 128"
        self.n_q = n_q
        self.dim = dim
        self.codebook_size = codebook_size
        self.time_tile = time_tile
        # Deterministic synthetic codebooks (kmeans/EMA-learned in real EnCodec).
        # TODO(synk): training-time EMA codebook update / kmeans init / commitment
        # loss are not modeled (eval-mode forward only, penalty == 0).
        key = jax.random.PRNGKey(seed)
        self.codebooks = codebook_scale * jax.random.normal(
            key, (n_q, codebook_size, dim), dtype=jnp.float32)
        # Pure functions of the parameters, precomputed once:
        self.cb_bf16 = self.codebooks.astype(jnp.bfloat16)          # [n_q, C, D]
        # Distance codebook pre-scaled by -2 (exact: power-of-two scale on bf16).
        self.cb_neg2_bf16 = (-2.0 * self.cb_bf16.astype(jnp.float32)
                             ).astype(jnp.bfloat16)                 # [n_q, C, D]
        self.cbt_bf16 = jnp.transpose(self.cb_bf16, (0, 2, 1))      # [n_q, D, C]
        cb_f = self.cb_bf16.astype(jnp.float32)
        self.cb_sq = jnp.sum(cb_f * cb_f, axis=-1)[..., None]       # [n_q, C, 1] f32

    def get_bandwidth_per_quantizer(self, frame_rate):
        return math.log2(self.codebook_size) * frame_rate

    def get_num_quantizers_for_bandwidth(self, frame_rate, bandwidth=None):
        bw_per_q = self.get_bandwidth_per_quantizer(frame_rate)
        n_q = self.n_q
        if bandwidth and bandwidth > 0.0:
            n_q = int(max(1, math.floor(bandwidth * 1000 / bw_per_q)))
        return n_q

    def forward(self, x, frame_rate, bandwidth=None):
        # x: [B, D, T]  (PyTorch Conv1d NCT layout), f32 or bf16.
        B, D, T = x.shape
        assert D == self.dim
        n_q = self.get_num_quantizers_for_bandwidth(frame_rate, bandwidth)
        bw_per_q = self.get_bandwidth_per_quantizer(frame_rate)

        # Time tiling: always pad T to a multiple of 128 so output stores are
        # lane-dense; use the full (padded) extent if it fits, else the tile.
        t128 = -(-T // 128) * 128
        tt = t128 if t128 <= self.time_tile else self.time_tile
        t_pad = -(-T // tt) * tt
        # v7x megacore: make sure the parallel grid extent (B * n_time_tiles) is
        # at least 2 when it can be done without breaking 128-alignment.
        if B * (t_pad // tt) < 2 and tt % 256 == 0:
            tt //= 2

        x_in = x
        if t_pad != T:
            x_in = jnp.pad(x_in, ((0, 0), (0, 0), (0, t_pad - T)))

        quant, codes_bqt = _rvq_pallas(
            x_in, self.cb_neg2_bf16[:n_q], self.cbt_bf16[:n_q],
            self.cb_sq[:n_q], tt)

        if t_pad != T:
            quant = quant[:, :, :T]
            codes_bqt = codes_bqt[:, :, :T]

        quantized = quant                                 # [B, D, T], x.dtype
        codes = jnp.transpose(codes_bqt, (1, 0, 2))       # [n_q, B, T] int32
        bw = jnp.asarray(n_q * bw_per_q, dtype=jnp.float32)
        penalty = jnp.zeros((), jnp.float32)              # eval-mode commit loss
        return {
            "quantized": quantized,   # [B, D, T]
            "codes": codes,           # [n_q, B, T] int32
            "bandwidth": bw,          # scalar
            "penalty": penalty,       # scalar (0.0 in eval)
        }


if __name__ == "__main__":
    # Small shapes; time_tile=128 so the time-tiling + residual-carry grid is
    # actually exercised (grid = (B=2, T/TT=2, n_q=4)).
    B, DIM, T = 2, 128, 256
    N_Q, CODEBOOK = 4, 256
    FRAME_RATE = 50

    rvq = ResidualVectorQuantizerPallas(
        n_q=N_Q, dim=DIM, codebook_size=CODEBOOK, seed=0,
        codebook_scale=0.3, time_tile=128)

    key = jax.random.PRNGKey(0)
    x = jax.random.normal(key, (B, DIM, T), dtype=jnp.float32)

    out = rvq.forward(x, frame_rate=FRAME_RATE, bandwidth=None)
    jax.block_until_ready(out)

    quantized, codes = out["quantized"], out["codes"]
    assert quantized.shape == (B, DIM, T)
    assert quantized.dtype == x.dtype
    assert codes.shape == (N_Q, B, T)
    assert bool(jnp.all(jnp.isfinite(quantized)))
    assert bool(jnp.all((codes >= 0) & (codes < CODEBOOK)))

    # Internal consistency: quantized output must equal the sum of the selected
    # (bf16-rounded) codebook rows given the emitted codes.
    cb_f32 = rvq.cb_bf16[:N_Q].astype(jnp.float32)            # [n_q, C, D]
    gathered = jnp.zeros((B, T, DIM), jnp.float32)
    for qi in range(N_Q):
        gathered = gathered + cb_f32[qi][codes[qi]]           # [B, T, D]
    gathered = jnp.transpose(gathered, (0, 2, 1))             # [B, D, T]
    assert bool(jnp.allclose(quantized, gathered, atol=1e-4, rtol=1e-4))

    # Stage-0 argmin agreement vs a pure-JAX f32 reference (bf16 dots and the
    # packed-key tie-breaking may flip rare near-ties, so require >= 90%).
    cb0 = rvq.cb_bf16[0].astype(jnp.float32)                  # [C, D]
    xt = jnp.transpose(x, (0, 2, 1)).reshape(B * T, DIM)      # [N, D]
    d0 = jnp.sum(cb0 * cb0, axis=-1)[None, :] - 2.0 * (xt @ cb0.T)
    ref_codes0 = jnp.argmin(d0, axis=-1).reshape(B, T)
    agree = float(jnp.mean((codes[0] == ref_codes0).astype(jnp.float32)))
    assert agree >= 0.9

    # Residual VQ must reduce the residual energy on average.
    assert float(jnp.mean((x - quantized) ** 2)) < float(jnp.mean(x ** 2))

    assert abs(float(out["bandwidth"]) -
               N_Q * math.log2(CODEBOOK) * FRAME_RATE) < 1e-3
    assert float(out["penalty"]) == 0.0

    # bf16 activation path (halved HBM in/out traffic), with a non-128 T to
    # exercise the pad-to-128 + slice-back logic.
    x_bf = jax.random.normal(jax.random.PRNGKey(1), (1, DIM, 200),
                             dtype=jnp.bfloat16)
    out_bf = rvq.forward(x_bf, frame_rate=FRAME_RATE, bandwidth=None)
    jax.block_until_ready(out_bf)
    assert out_bf["quantized"].shape == (1, DIM, 200)
    assert out_bf["quantized"].dtype == jnp.bfloat16
    assert out_bf["codes"].shape == (N_Q, 1, 200)
    assert bool(jnp.all(jnp.isfinite(out_bf["quantized"].astype(jnp.float32))))
    assert bool(jnp.all((out_bf["codes"] >= 0) & (out_bf["codes"] < CODEBOOK)))

    print("KERNEL_OK")
</pallas_src>

<mosaic_0001>
module attributes {stable_mosaic.version = 11 : i64} {
  func.func @_rvq_kernel(%arg0: i32, %arg1: i32, %arg2: i32, %arg3: memref<1x128x128xf32, #tpu.memory_space<vmem>>, %arg4: memref<4x256x128xbf16, #tpu.memory_space<vmem>>, %arg5: memref<4x128x256xbf16, #tpu.memory_space<vmem>>, %arg6: memref<4x256x1xf32, #tpu.memory_space<vmem>>, %arg7: memref<1x128x128xf32, #tpu.memory_space<vmem>>, %arg8: memref<1x4x128xi32, #tpu.memory_space<vmem>>, %arg9: memref<128x128xf32, #tpu.memory_space<vmem>>, %arg10: memref<128x128xf32, #tpu.memory_space<vmem>>) attributes {dimension_semantics = [#tpu.dimension_semantics<parallel>, #tpu.dimension_semantics<parallel>, #tpu.dimension_semantics<arbitrary>], iteration_bounds = array<i64: 2, 2, 4>, scalar_prefetch = 0 : i64, scratch_operands = 2 : i64, tpu.core_type = #tpu.core_type<tc>, window_params = [{transform_indices = @transform_0, window_bounds = array<i64: 1, 128, 128>}, {pipeline_mode = #tpu.pipeline_mode<synchronous>, transform_indices = @transform_1, window_bounds = array<i64: 4, 256, 128>}, {pipeline_mode = #tpu.pipeline_mode<synchronous>, transform_indices = @transform_2, window_bounds = array<i64: 4, 128, 256>}, {pipeline_mode = #tpu.pipeline_mode<synchronous>, transform_indices = @transform_3, window_bounds = array<i64: 4, 256, 1>}, {transform_indices = @transform_4, window_bounds = array<i64: 1, 128, 128>}, {transform_indices = @transform_5, window_bounds = array<i64: 1, 4, 128>}]} {
    %c0_i32 = arith.constant 0 : i32
    %0 = arith.cmpi eq, %arg2, %c0_i32 : i32
    %1 = arith.extui %0 : i1 to i32
    %c0_i32_0 = arith.constant 0 : i32
    %2 = arith.cmpi ne, %1, %c0_i32_0 : i32
    scf.if %2 {
      %c0_20 = arith.constant 0 : index
      %c0_21 = arith.constant 0 : index
      %c0_22 = arith.constant 0 : index
      %49 = vector.load %arg3[%c0_20, %c0_21, %c0_22] : memref<1x128x128xf32, #tpu.memory_space<vmem>>, vector<1x128x128xf32>
      %50 = vector.shape_cast %49 : vector<1x128x128xf32> to vector<128x128xf32>
      %c0_23 = arith.constant 0 : index
      %c0_24 = arith.constant 0 : index
      %51 = vector.load %arg9[%c0_23, %c0_24] : memref<128x128xf32, #tpu.memory_space<vmem>>, vector<128x128xf32>
      tpu.vector_store %arg9[%c0_23, %c0_24], %50 {strides = array<i32>} : memref<128x128xf32, #tpu.memory_space<vmem>>, vector<128x128xf32>,
      %cst_25 = arith.constant 0.000000e+00 : f32
      %52 = vector.broadcast %cst_25 : f32 to vector<128x128xf32>
      %c0_26 = arith.constant 0 : index
      %c0_27 = arith.constant 0 : index
      %53 = vector.load %arg10[%c0_26, %c0_27] : memref<128x128xf32, #tpu.memory_space<vmem>>, vector<128x128xf32>
      tpu.vector_store %arg10[%c0_26, %c0_27], %52 {strides = array<i32>} : memref<128x128xf32, #tpu.memory_space<vmem>>, vector<128x128xf32>,
    } else {
    }
    %c0 = arith.constant 0 : index
    %c0_1 = arith.constant 0 : index
    %3 = vector.load %arg9[%c0, %c0_1] : memref<128x128xf32, #tpu.memory_space<vmem>>, vector<128x128xf32>
    %4 = arith.index_cast %arg2 : i32 to index
    %c0_2 = arith.constant 0 : index
    %c0_3 = arith.constant 0 : index
    %5 = vector.load %arg4[%4, %c0_2, %c0_3] : memref<4x256x128xbf16, #tpu.memory_space<vmem>>, vector<1x256x128xbf16>
    %6 = vector.shape_cast %5 : vector<1x256x128xbf16> to vector<256x128xbf16>
    %7 = arith.index_cast %arg2 : i32 to index
    %c0_4 = arith.constant 0 : index
    %c0_5 = arith.constant 0 : index
    %8 = vector.load %arg5[%7, %c0_4, %c0_5] : memref<4x128x256xbf16, #tpu.memory_space<vmem>>, vector<1x128x256xbf16>
    %9 = vector.shape_cast %8 : vector<1x128x256xbf16> to vector<128x256xbf16>
    %10 = arith.index_cast %arg2 : i32 to index
    %c0_6 = arith.constant 0 : index
    %c0_7 = arith.constant 0 : index
    %11 = vector.load %arg6[%10, %c0_6, %c0_7] : memref<4x256x1xf32, #tpu.memory_space<vmem>>, vector<1x256x1xf32>
    %12 = vector.shape_cast %11 : vector<1x256x1xf32> to vector<256x1xf32>
    %13 = arith.truncf %3 : vector<128x128xf32> to vector<128x128xbf16>
    %cst = arith.constant dense<0.000000e+00> : vector<256x128xf32>
    %14 = tpu.matmul %6, %13, %cst {dimension_numbers = #tpu.dot_dimension_numbers<[1], [0], [0], [1], [0, 0, 1, 1], [], []>} : vector<256x128xbf16>, vector<128x128xbf16>, vector<256x128xf32> -> vector<256x128xf32>
    %15 = vector.broadcast %12 : vector<256x1xf32> to vector<256x128xf32>
    %16 = arith.addf %15, %14 : vector<256x128xf32>
    %17 = tpu.bitcast %16 : vector<256x128xf32> -> vector<256x128xi32>
    %c0_i32_8 = arith.constant 0 : i32
    %18 = vector.broadcast %c0_i32_8 : i32 to vector<256x128xi32>
    %19 = arith.cmpi sge, %17, %18 : vector<256x128xi32>
    %c2147483647_i32 = arith.constant 2147483647 : i32
    %20 = vector.broadcast %c2147483647_i32 : i32 to vector<256x128xi32>
    %21 = arith.xori %17, %20 : vector<256x128xi32>
    %22 = arith.select %19, %17, %21 : vector<256x128xi1>, vector<256x128xi32>
    %23 = tpu.iota {dimensions = array<i32: 0>} : vector<256x128xi32>
    %c-256_i32 = arith.constant -256 : i32
    %24 = vector.broadcast %c-256_i32 : i32 to vector<256x128xi32>
    %25 = arith.andi %22, %24 : vector<256x128xi32>
    %26 = arith.ori %25, %23 : vector<256x128xi32>
    %cst_9 = arith.constant dense<2147483647> : vector<128xi32>
    %27 = vector.multi_reduction <minsi>, %26, %cst_9 [0] : vector<256x128xi32> to vector<128xi32>
    %28 = vector.shape_cast %27 : vector<128xi32> to vector<1x128xi32>
    %c255_i32 = arith.constant 255 : i32
    %29 = vector.broadcast %c255_i32 : i32 to vector<1x128xi32>
    %30 = arith.andi %28, %29 : vector<1x128xi32>
    %c0_10 = arith.constant 0 : index
    %31 = arith.index_cast %arg2 : i32 to index
    %c0_11 = arith.constant 0 : index
    %32 = vector.load %arg8[%c0_10, %31, %c0_11] : memref<1x4x128xi32, #tpu.memory_space<vmem>>, vector<1x1x128xi32>
    %33 = vector.shape_cast %32 : vector<1x1x128xi32> to vector<1x128xi32>
    %34 = vector.shape_cast %30 : vector<1x128xi32> to vector<1x1x128xi32>
    tpu.vector_store %arg8[%c0_10, %31, %c0_11], %34 {strides = array<i32>} : memref<1x4x128xi32, #tpu.memory_space<vmem>>, vector<1x1x128xi32>,
    %35 = vector.broadcast %28 : vector<1x128xi32> to vector<256x128xi32>
    %36 = arith.cmpi eq, %26, %35 : vector<256x128xi32>
    %37 = arith.extui %36 : vector<256x128xi1> to vector<256x128xi32>
    %38 = arith.sitofp %37 : vector<256x128xi32> to vector<256x128xf32>
    %39 = arith.truncf %38 : vector<256x128xf32> to vector<256x128xbf16>
    %cst_12 = arith.constant dense<0.000000e+00> : vector<128x128xf32>
    %40 = tpu.matmul %9, %39, %cst_12 {dimension_numbers = #tpu.dot_dimension_numbers<[1], [0], [0], [1], [0, 0, 1, 1], [], []>} : vector<128x256xbf16>, vector<256x128xbf16>, vector<128x128xf32> -> vector<128x128xf32>
    %41 = arith.subf %3, %40 : vector<128x128xf32>
    %c0_13 = arith.constant 0 : index
    %c0_14 = arith.constant 0 : index
    %42 = vector.load %arg9[%c0_13, %c0_14] : memref<128x128xf32, #tpu.memory_space<vmem>>, vector<128x128xf32>
    tpu.vector_store %arg9[%c0_13, %c0_14], %41 {strides = array<i32>} : memref<128x128xf32, #tpu.memory_space<vmem>>, vector<128x128xf32>,
    %c0_15 = arith.constant 0 : index
    %c0_16 = arith.constant 0 : index
    %43 = vector.load %arg10[%c0_15, %c0_16] : memref<128x128xf32, #tpu.memory_space<vmem>>, vector<128x128xf32>
    %44 = arith.addf %43, %40 : vector<128x128xf32>
    %c0_17 = arith.constant 0 : index
    %c0_18 = arith.constant 0 : index
    %45 = vector.load %arg10[%c0_17, %c0_18] : memref<128x128xf32, #tpu.memory_space<vmem>>, vector<128x128xf32>
    tpu.vector_store %arg10[%c0_17, %c0_18], %44 {strides = array<i32>} : memref<128x128xf32, #tpu.memory_space<vmem>>, vector<128x128xf32>,
    %c3_i32 = arith.constant 3 : i32
    %46 = arith.cmpi eq, %arg2, %c3_i32 : i32
    %47 = arith.extui %46 : i1 to i32
    %c0_i32_19 = arith.constant 0 : i32
    %48 = arith.cmpi ne, %47, %c0_i32_19 : i32
    scf.if %48 {
      %c0_20 = arith.constant 0 : index
      %c0_21 = arith.constant 0 : index
      %49 = vector.load %arg10[%c0_20, %c0_21] : memref<128x128xf32, #tpu.memory_space<vmem>>, vector<128x128xf32>
      %c0_22 = arith.constant 0 : index
      %c0_23 = arith.constant 0 : index
      %c0_24 = arith.constant 0 : index
      %50 = vector.load %arg7[%c0_22, %c0_23, %c0_24] : memref<1x128x128xf32, #tpu.memory_space<vmem>>, vector<1x128x128xf32>
      %51 = vector.shape_cast %50 : vector<1x128x128xf32> to vector<128x128xf32>
      %52 = vector.shape_cast %49 : vector<128x128xf32> to vector<1x128x128xf32>
      tpu.vector_store %arg7[%c0_22, %c0_23, %c0_24], %52 {strides = array<i32>} : memref<1x128x128xf32, #tpu.memory_space<vmem>>, vector<1x128x128xf32>,
    } else {
    }
    return
  }
  func.func @transform_0(%arg0: i32, %arg1: i32, %arg2: i32) -> (i32, i32, i32) {
    %c0_i32 = arith.constant 0 : i32
    %c0_i32_0 = arith.constant 0 : i32
    return %arg0, %c0_i32, %arg1 : i32, i32, i32
  }
  func.func @transform_1(%arg0: i32, %arg1: i32, %arg2: i32) -> (i32, i32, i32) {
    %c0_i32 = arith.constant 0 : i32
    %c0_i32_0 = arith.constant 0 : i32
    %c0_i32_1 = arith.constant 0 : i32
    %c0_i32_2 = arith.constant 0 : i32
    return %c0_i32, %c0_i32_0, %c0_i32_1 : i32, i32, i32
  }
  func.func @transform_2(%arg0: i32, %arg1: i32, %arg2: i32) -> (i32, i32, i32) {
    %c0_i32 = arith.constant 0 : i32
    %c0_i32_0 = arith.constant 0 : i32
    %c0_i32_1 = arith.constant 0 : i32
    %c0_i32_2 = arith.constant 0 : i32
    return %c0_i32, %c0_i32_0, %c0_i32_1 : i32, i32, i32
  }
  func.func @transform_3(%arg0: i32, %arg1: i32, %arg2: i32) -> (i32, i32, i32) {
    %c0_i32 = arith.constant 0 : i32
    %c0_i32_0 = arith.constant 0 : i32
    %c0_i32_1 = arith.constant 0 : i32
    %c0_i32_2 = arith.constant 0 : i32
    return %c0_i32, %c0_i32_0, %c0_i32_1 : i32, i32, i32
  }
  func.func @transform_4(%arg0: i32, %arg1: i32, %arg2: i32) -> (i32, i32, i32) {
    %c0_i32 = arith.constant 0 : i32
    %c0_i32_0 = arith.constant 0 : i32
    return %arg0, %c0_i32, %arg1 : i32, i32, i32
  }
  func.func @transform_5(%arg0: i32, %arg1: i32, %arg2: i32) -> (i32, i32, i32) {
    %c0_i32 = arith.constant 0 : i32
    %c0_i32_0 = arith.constant 0 : i32
    return %arg0, %c0_i32, %arg1 : i32, i32, i32
  }
}

</mosaic_0001>

<bundles_post_ra>
// kernel: tpu_custom_call.1
= control target key start
LH: loop header
LB: loop body
LE: loop exit
PB: predicated region body
PF: predicated region fallthrough
CT: control target
= control target key end

     0   :  { %11 = vsyncpa [#allocation6], 0  ;;  %s3281_s0 = inlined_call_operand.vmem [shape: f32[2,128,256], index: 0, kind: input, shape index: {}]   ;;  %s3282_s1 = inlined_call_operand.vmem [shape: bf16[4,256,128], index: 1, kind: input, shape index: {}]   ;;  %s3283_s2 = inlined_call_operand.hbm [shape: bf16[4,128,256], index: 2, kind: input, shape index: {}]   ;;  %s3284_s3 = inlined_call_operand.vmem [shape: f32[4,256,1], index: 3, kind: input, shape index: {}]   ;;  %s3285_s4 = inlined_call_operand.hbm [shape: f32[2,128,256], index: 4, kind: output, shape index: {0}]   ;;  %s3286_s5 = inlined_call_operand.hbm [shape: s32[2,4,256], index: 5, kind: output, shape index: {1}]  }
   0x1   :  { %12 = vsyncpa [#allocation7], 0 }
   0x2   :  { %14 = vsyncpa [#allocation7 + $0x1], 0 }
   0x3   :  { %15 = vsyncpa [#allocation10], 0 }
   0x4   :  { %17 = vsyncpa [#allocation10 + $0x1], 0  ;;  %s2511_s18 = smov 0   ;;  %s2513_s19 = smov 0  }
   0x5   :  { %s2515_s20 = smov 0   ;;  %s2517_s21 = smov 0  }
   0x6   :  { %s2519_s22 = smov 0   ;;  %s2521_s23 = smov 0  }
   0x7   :  { %s2523_s24 = smov 0   ;;  %s2525_s25 = smov 0  }
   0x8   :  { %s2527_s26 = smov 0   ;;  %s2529_s27 = smov 0  }
   0x9 LB: > { %3296 = sst [smem:[#allocation14_spill]] %s2432_s18  ;;  %s1864_s28 = sadd.s32 4294967295, %s2468_s27   ;;  %s2468_s27 = sphi %s2529_s27, %s23_s27   ;;  %s2464_s26 = sphi %s2527_s26, %s3344_s26   ;;  %s2460_s25 = sphi %s2525_s25, %s3343_s25   ;;  %s2456_s24 = sphi %s2523_s24, %s3335_s24   ;;  %s2452_s23 = sphi %s2521_s23, %s3342_s23   ;;  %s2448_s22 = sphi %s2519_s22, %s3341_s22   ;;  %s2444_s21 = sphi %s2517_s21, %s3334_s21   ;;  %s2440_s20 = sphi %s2515_s20, %s3340_s20   ;;  %s2436_s19 = sphi %s2513_s19, %s3339_s19   ;;  %s2432_s18 = sphi %s2511_s18, %s3338_s18  }
   0xa   : > { %3297 = sst [smem:[#allocation15_spill]] %s2456_s24  ;;  %s1865_s29 = sadd.s32 4294967294, %s2468_s27  }
   0xb   : > { %s35_s30 = sadd.s32 1, %s2456_s24  ;;  %s38_s6 = sadd.s32 1, %s2460_s25 }
   0xc   : > { %p36_p0 = scmp.ge.s32.totalorder %s35_s30, 4  ;;  %s42_s7 = sadd.s32 1, %s2464_s26 }
   0xd   : > { %s51_s8 = sadd.s32 1, %s2440_s20  ;;  %p58_p1 = scmp.ne.s32.totalorder %s2440_s20, %s2436_s19 }
   0xe   : > { %s3346_s30 = smov (%p36_p0, %s35_s30), 0  ;;  %s3348_s6 = smov (!%p36_p0, %s38_s6), %s2460_s25 }
   0xf   : > { %3298 = sst [smem:[#allocation16_spill]] %s3346_s30  ;;  %p59_p2 = scmp.eq.s32.totalorder %s2468_s27, 0 }
  0x10   : > { %p153_p3 = scmp.eq.s32.totalorder %s1864_s28, 15  ;;  %p40_p4 = scmp.ge.s32.totalorder %s3348_s6, 2 }
  0x11   : > { %p158_p5 = scmp.ne.s32.totalorder %s2436_s19, %s2432_s18  ;;  %p2575_p6 = por %p59_p2, %p58_p1 }
  0x12   : > { %p2579_p7 = por %p153_p3, %p58_p1  ;;  %s3350_s6 = smov (%p40_p4, %s3348_s6), 0 }
  0x13   : > { %s3299_s9 = scalar_select %p2575_p6, 1, 0 }
  0x14   : > { %s3300_s10 = scalar_select %p2579_p7, 1, 0 }
  0x15   : > { %3301 = sst [smem:[#allocation17_spill]] %s3350_s6  ;;  %s3352_s7 = smov (!%p40_p4, %s42_s7), %s2464_s26 }
  0x16   : > { %s47_s11 = ssub.s32 %s2460_s25, %s3350_s6  ;;  %p159_p8 = scmp.eq.s32.totalorder %s1865_s29, 15 }
  0x17   : > { %p44_p9 = scmp.ge.s32.totalorder %s3352_s7, 2  ;;  %p1866_p10 = scmp.ge.s32.totalorder %s2468_s27, 1 }
  0x18   : > { %p2589_p11 = por %p159_p8, %p158_p5  ;;  %p194_p12 = scmp.lt.s32.totalorder %s2468_s27, 17 }
  0x19   : > { %s3354_s7 = smov (%p44_p9, %s3352_s7), 0  ;;  %p2602_p0 = scmp.eq.s32.totalorder %s1864_s28, 0 }
  0x1a   : > { %s3302_s12 = scalar_select %p2589_p11, 1, 0 }
  0x1b   : > { %3304 = sst [smem:[#allocation19_spill]] %s3354_s7  ;;  %p2596_p13 = pnand %p1866_p10, %p194_p12 }
  0x1c   : > { %3303 = sst [smem:[#allocation18_spill]] %s3302_s12  ;;  %s46_s14 = ssub.s32 %s2464_s26, %s3354_s7 }
  0x1d   : > { %s3305_s13 = scalar_select %p2596_p13, 1, 0 }
  0x1e   : > { %s3306_s15 = scalar_select %p2602_p0, 1, 0 }
  0x1f   : > { %s48_s16 = sor.u32 %s47_s11, %s46_s14  ;;  %p2133_p1 = pneg %p2596_p13 }
  0x20   : > { %p49_p2 = scmp.eq.s32.totalorder %s48_s16, 0  ;;  %s2470_s17 = smov [#allocation5]  }
  0x21   : > { %s209_s29 = sshll.u32 %s2470_s17, 4  ;;  %p2610_p3 = pnand %p2602_p0, %p2133_p1  ;;  %s210_s29 = int_to_ptr.vmem [resolvable:$true] %s209_s29 }
  0x22   : > { %s2615_s30 = scalar_select %p49_p2, %s2440_s20, %s51_s8  }
  0x23   : > { %s2294_s24 = scalar_lea.hbm %s3283_s2, 8192  ;;  %p2296_p5 = pneg %p2610_p3 }
  0x24   : > { %3308 = sst [smem:[#allocation20_spill]] %s2615_s30  ;;  %p2295_p4 = scmp.ne.s32.totalorder %s3283_s2, %s2294_s24 }
  0x25   : > { %p2301_p10 = scmp.lt.u32.totalorder %s2294_s24, %s3283_s2 }
  0x26   : > { %p2297_p8 = pnand %p2296_p5, %p2295_p4 }
  0x28   : > { %p2298_p9 = pneg %p2297_p8 }
  0x2a   : > { %p2303_p12 = pnand %p2301_p10, %p2298_p9 }
  0x2c   : > { %2306 = shalt.err (!%p2303_p12)
}
  0x2d   : > { %s2307_s8 = scalar_lea.vmem %s210_s29, 8192  ;;  %p2315_p7 = scmp.lt.s32.totalorder %s210_s29, %s210_s29 }
  0x2e   : > { %p2308_p1 = scmp.ne.s32.totalorder %s210_s29, %s2307_s8  ;;  %p2316_p0 = scmp.lt.s32.totalorder %s2307_s8, %s2307_s8 }
  0x30   : > { %p2310_p2 = pnand %p2308_p1, %p2296_p5  ;;  %p2317_p13 = por %p2316_p0, %p2315_p7 }
  0x32   : > { %p2311_p11 = pneg %p2310_p2 }
  0x34   : > { %p2318_p6 = pnand %p2317_p13, %p2311_p11 }
  0x36   : > { %2321 = shalt.err (!%p2318_p6)
}
  0x37   : > { %s2471_s7 = smov 128   ;;  %s2472_s12 = smov 8  }
  0x38   : > { %2136 = dma.hbm_to_vmem [thread:$0]  (!%p2610_p3), %s3283_s2, 8192, %s210_s29, [#allocation6], %s2471_s7, %s2471_s7, %s2472_s12  }
  0x39   : > { %p1868_p4 = scmp.ge.s32.totalorder %s2468_s27, 16 }
  0x3a   : > { %p3309_p8 = scmp.ne.s32.totalorder (!%p1868_p4), %s3299_s9, 0 }
  0x3b   : > { %222 = sbr.rel (%p1868_p4) target bundleno = 80 (0x50), region = 28 }
  0x42   : > { %225 = sbr.rel (!%p3309_p8) target bundleno = 80 (0x50), region = 32  ;;  %s227_s24 = sand.u32 (%p3309_p8), 1, %s2440_s20  }
  0x43   : > { %s1870_s11 = sshll.u32 (%p3309_p8), %s2464_s26, 5  ;;  %s1869_s14 = sshll.u32 (%p3309_p8), %s227_s24, 7 }
  0x44   : > { %s231_s16 = sadd.s32 (%p3309_p8), %s2460_s25, %s1870_s11  ;;  %s229_s9 = scalar_lea.vmem (%p3309_p8), [#allocation4], %s1869_s14 }
  0x45   : > { %s1871_s8 = sshll.u32 (%p3309_p8), %s231_s16, 3 }
  0x46   : > { %s2642_s18 = scalar_lea.vmem (%p3309_p8), %s3281_s0, %s1871_s8 }
  0x47   : > { %v291_v0 = vld [vmem:[%s2642_s18] sm:$0xff] (%p3309_p8)  ;;  %v293_v1 = vld [vmem:[%s2642_s18 + $0x10] sm:$0xff] (%p3309_p8) }
  0x48   : > { %v295_v2 = vld [vmem:[%s2642_s18 + $0x20] sm:$0xff] (%p3309_p8)  ;;  %292 = vst [vmem:[%s229_s9] sm:$0xff] (%p3309_p8), %v291_v0  ;;  %294 = vst [vmem:[%s229_s9 + $0x8] sm:$0xff] (%p3309_p8), %v293_v1  ;;  %v297_v3 = vld [vmem:[%s2642_s18 + $0x30] sm:$0xff] (%p3309_p8) }
  0x49   : > { %296 = vst [vmem:[%s229_s9 + $0x10] sm:$0xff] %v295_v2  ;;  %v299_v4 = vld [vmem:[%s2642_s18 + $0x40] sm:$0xff]  ;;  %v301_v5 = vld [vmem:[%s2642_s18 + $0x50] sm:$0xff]  ;;  %298 = vst [vmem:[%s229_s9 + $0x18] sm:$0xff] %v297_v3 }
  0x4a   : > { %300 = vst [vmem:[%s229_s9 + $0x20] sm:$0xff] %v299_v4  ;;  %302 = vst [vmem:[%s229_s9 + $0x28] sm:$0xff] %v301_v5  ;;  %v303_v6 = vld [vmem:[%s2642_s18 + $0x60] sm:$0xff]  ;;  %v305_v7 = vld [vmem:[%s2642_s18 + $0x70] sm:$0xff] }
  0x4b   : > { %v307_v8 = vld [vmem:[%s2642_s18 + $0x80] sm:$0xff]  ;;  %304 = vst [vmem:[%s229_s9 + $0x30] sm:$0xff] %v303_v6  ;;  %306 = vst [vmem:[%s229_s9 + $0x38] sm:$0xff] %v305_v7  ;;  %v309_v9 = vld [vmem:[%s2642_s18 + $0x90] sm:$0xff] }
  0x4c   : > { %308 = vst [vmem:[%s229_s9 + $0x40] sm:$0xff] %v307_v8  ;;  %v311_v10 = vld [vmem:[%s2642_s18 + $0xa0] sm:$0xff]  ;;  %v313_v11 = vld [vmem:[%s2642_s18 + $0xb0] sm:$0xff]  ;;  %310 = vst [vmem:[%s229_s9 + $0x48] sm:$0xff] %v309_v9 }
  0x4d   : > { %312 = vst [vmem:[%s229_s9 + $0x50] sm:$0xff] %v311_v10  ;;  %314 = vst [vmem:[%s229_s9 + $0x58] sm:$0xff] %v313_v11  ;;  %v315_v12 = vld [vmem:[%s2642_s18 + $0xc0] sm:$0xff]  ;;  %v317_v13 = vld [vmem:[%s2642_s18 + $0xd0] sm:$0xff] }
  0x4e   : > { %v319_v14 = vld [vmem:[%s2642_s18 + $0xe0] sm:$0xff]  ;;  %316 = vst [vmem:[%s229_s9 + $0x60] sm:$0xff] %v315_v12  ;;  %318 = vst [vmem:[%s229_s9 + $0x68] sm:$0xff] %v317_v13  ;;  %v321_v15 = vld [vmem:[%s2642_s18 + $0xf0] sm:$0xff] }
  0x4f   : > { %320 = vst [vmem:[%s229_s9 + $0x70] sm:$0xff] %v319_v14  ;;  %322 = vst [vmem:[%s229_s9 + $0x78] sm:$0xff] %v321_v15 }
  0x50 PF: > { %p3310_p6 = scmp.ne.s32.totalorder %s3305_s13, 0 }
  0x51   : > { %s2663_s30 = sand.u32 (!%p3310_p6), 1, %s2436_s19   ;;  %p3311_p7 = scmp.ne.s32.totalorder (!%p3310_p6), %s3306_s15, 0 }
  0x52   : > { %331 = sbr.rel (%p3310_p6) target bundleno = 815 (0x32f), region = 70  ;;  %s1873_s29 = sshll.u32 (!%p3310_p6), %s2663_s30, 7 }
  0x53   : > { %s2666_s7 = scalar_lea.vmem (!%p3310_p6), [#allocation4], %s1873_s29 }
  0x59   : > { %2419 = dma.done.wait (%p3311_p7), [#allocation6], 8192  }
  0x5a   : > { %2421 = vsyncadd (%p3311_p7), [#allocation6], 4294959104  ;;  %s1876_s18 = sshll.u32 %s2663_s30, 2  ;;  %s2673_s12 = scalar_lea.vmem [#allocation8], %s1873_s29 }
  0x5b   : > { %s2675_s17 = scalar_lea.vmem [#allocation9], %s1876_s18  ;;  %p1877_p11 = scmp.ne.s32.totalorder %s2444_s21, 0 }
  0x5c   : > { %v375_v16 = vld [vmem:[%s2666_s7] sm:$0xff] (!%p1877_p11)  ;;  %v376_v17 = vld [vmem:[%s2666_s7 + $0x8] sm:$0xff] (!%p1877_p11)  ;;  %v377_v18 = vld [vmem:[%s2666_s7 + $0x10] sm:$0xff] (!%p1877_p11)  ;;  %v2473_v22 = vmov (!%p1877_p11), 0.0  }
  0x5d   : > { %374 = sbr.rel (%p1877_p11) target bundleno = 109 (0x6d), region = 82  ;;  %391 = vst [vmem:[#allocation2] sm:$0xff] (!%p1877_p11), %v375_v16  ;;  %392 = vst [vmem:[#allocation2 + $0x8] sm:$0xff] (!%p1877_p11), %v376_v17  ;;  %v378_v19 = vld [vmem:[%s2666_s7 + $0x18] sm:$0xff] (!%p1877_p11)  ;;  %v379_v20 = vld [vmem:[%s2666_s7 + $0x20] sm:$0xff] (!%p1877_p11) }
  0x5e   : > { %393 = vst [vmem:[#allocation2 + $0x10] sm:$0xff] (!%p1877_p11), %v377_v18  ;;  %v380_v21 = vld [vmem:[%s2666_s7 + $0x28] sm:$0xff] (!%p1877_p11)  ;;  %407 = vst [vmem:[#allocation3] sm:$0xff] (!%p1877_p11), %v2473_v22  ;;  %v381_v23 = vld [vmem:[%s2666_s7 + $0x30] sm:$0xff] (!%p1877_p11) }
  0x5f   : > { %408 = vst [vmem:[#allocation3 + $0x8] sm:$0xff] (!%p1877_p11), %v2473_v22  ;;  %409 = vst [vmem:[#allocation3 + $0x10] sm:$0xff] (!%p1877_p11), %v2473_v22  ;;  %v382_v24 = vld [vmem:[%s2666_s7 + $0x38] sm:$0xff] (!%p1877_p11)  ;;  %v383_v25 = vld [vmem:[%s2666_s7 + $0x40] sm:$0xff] (!%p1877_p11) }
  0x60   : > { %410 = vst [vmem:[#allocation3 + $0x18] sm:$0xff] (!%p1877_p11), %v2473_v22  ;;  %411 = vst [vmem:[#allocation3 + $0x20] sm:$0xff] (!%p1877_p11), %v2473_v22  ;;  %v384_v26 = vld [vmem:[%s2666_s7 + $0x48] sm:$0xff] (!%p1877_p11)  ;;  %v385_v27 = vld [vmem:[%s2666_s7 + $0x50] sm:$0xff] (!%p1877_p11) }
  0x61   : > { %412 = vst [vmem:[#allocation3 + $0x28] sm:$0xff] (!%p1877_p11), %v2473_v22  ;;  %413 = vst [vmem:[#allocation3 + $0x30] sm:$0xff] (!%p1877_p11), %v2473_v22  ;;  %v386_v28 = vld [vmem:[%s2666_s7 + $0x58] sm:$0xff] (!%p1877_p11)  ;;  %v387_v29 = vld [vmem:[%s2666_s7 + $0x60] sm:$0xff] (!%p1877_p11) }
  0x62   : > { %414 = vst [vmem:[#allocation3 + $0x38] sm:$0xff] (!%p1877_p11), %v2473_v22  ;;  %415 = vst [vmem:[#allocation3 + $0x40] sm:$0xff] (!%p1877_p11), %v2473_v22  ;;  %v388_v30 = vld [vmem:[%s2666_s7 + $0x68] sm:$0xff] (!%p1877_p11)  ;;  %v389_v31 = vld [vmem:[%s2666_s7 + $0x70] sm:$0xff] (!%p1877_p11) }
  0x63   : > { %416 = vst [vmem:[#allocation3 + $0x48] sm:$0xff] (!%p1877_p11), %v2473_v22  ;;  %417 = vst [vmem:[#allocation3 + $0x50] sm:$0xff] (!%p1877_p11), %v2473_v22  ;;  %v390_v32 = vld [vmem:[%s2666_s7 + $0x78] sm:$0xff] (!%p1877_p11) }
  0x64   : > { %418 = vst [vmem:[#allocation3 + $0x58] sm:$0xff] %v2473_v22  ;;  %419 = vst [vmem:[#allocation3 + $0x60] sm:$0xff] %v2473_v22 }
  0x65   : > { %420 = vst [vmem:[#allocation3 + $0x68] sm:$0xff] %v2473_v22  ;;  %421 = vst [vmem:[#allocation3 + $0x70] sm:$0xff] %v2473_v22 }
  0x66   : > { %422 = vst [vmem:[#allocation3 + $0x78] sm:$0xff] %v2473_v22  ;;  %394 = vst [vmem:[#allocation2 + $0x18] sm:$0xff] %v378_v19 }
  0x67   : > { %395 = vst [vmem:[#allocation2 + $0x20] sm:$0xff] %v379_v20  ;;  %396 = vst [vmem:[#allocation2 + $0x28] sm:$0xff] %v380_v21 }
  0x68   : > { %397 = vst [vmem:[#allocation2 + $0x30] sm:$0xff] %v381_v23  ;;  %398 = vst [vmem:[#allocation2 + $0x38] sm:$0xff] %v382_v24 }
  0x69   : > { %399 = vst [vmem:[#allocation2 + $0x40] sm:$0xff] %v383_v25  ;;  %400 = vst [vmem:[#allocation2 + $0x48] sm:$0xff] %v384_v26 }
  0x6a   : > { %401 = vst [vmem:[#allocation2 + $0x50] sm:$0xff] %v385_v27  ;;  %402 = vst [vmem:[#allocation2 + $0x58] sm:$0xff] %v386_v28 }
  0x6b   : > { %403 = vst [vmem:[#allocation2 + $0x60] sm:$0xff] %v387_v29  ;;  %404 = vst [vmem:[#allocation2 + $0x68] sm:$0xff] %v388_v30 }
  0x6c   : > { %405 = vst [vmem:[#allocation2 + $0x70] sm:$0xff] %v389_v31  ;;  %406 = vst [vmem:[#allocation2 + $0x78] sm:$0xff] %v390_v32 }
  0x6d PF: > { %v423_v33 = vld [vmem:[#allocation2] sm:$0xff]  ;;  %v424_v34 = vld [vmem:[#allocation2 + $0x8] sm:$0xff]  ;;  %s1987_s13 = sshll.u32 %s2444_s21, 7  ;;  %v426_v37 = vld [vmem:[#allocation2 + $0x18] sm:$0xff]  ;;  %v2474_v38 = vmov 0   ;;  %s1881_s11 = sshll.u32 %s2444_s21, 8 }
  0x6e   : > { %v425_v35 = vld [vmem:[#allocation2 + $0x10] sm:$0xff]  ;;  %v526_v36 = vpack.c.bf16 %v424_v34, %v423_v33  ;;  %2237 = vset.pattern.permute.xlu1 %v2474_v38  ;;  %2236 = vset.pattern.permute.xlu0 %v2474_v38  ;;  %v427_v40 = vld [vmem:[#allocation2 + $0x20] sm:$0xff]  ;;  %v428_v41 = vld [vmem:[#allocation2 + $0x28] sm:$0xff]  ;;  %s2700_s24 = scalar_lea.vmem %s3282_s1, %s1987_s13  ;;  %s2707_s8 = scalar_lea.vmem %s3284_s3, %s1881_s11 }
  0x6f   : > { %v527_v39 = vpack.c.bf16 %v426_v37, %v425_v35  ;;  %v429_v42 = vld [vmem:[#allocation2 + $0x30] sm:$0xff]  ;;  %v528_v43 = vpack.c.bf16 %v428_v41, %v427_v40  ;;  %v430_v44 = vld [vmem:[#allocation2 + $0x38] sm:$0xff]  ;;  %v2238_v45 = vld [vmem:[%s2700_s24] sm:$0xff]   ;;  %s2768_s6 = scalar_lea.vmem [#allocation5], %s1987_s13  ;;  %s1280_s9 = scalar_lea.vmem %s2675_s17, %s2444_s21 [#allocation9] }
  0x70   : > { %2077 = vmatprep.subr.bf16.mxu0 %v526_v36  ;;  %2093 = vmatprep.mubr.bf16.mxu0 %v2238_v45  ;;  %v529_v46 = vpack.c.bf16 %v430_v44, %v429_v42  ;;  %v431_v47 = vld [vmem:[#allocation2 + $0x40] sm:$0xff]  ;;  %v432_v48 = vld [vmem:[#allocation2 + $0x48] sm:$0xff]  ;;  %v496_v49 = vld [vmem:[%s2707_s8 + $0x10] sm:$0xff]  ;;  %p1978_p13 = scmp.ne.s32.totalorder %s2444_s21, 3 }
  0x71   : > { %2078 = vmatpush3.bf16.msra.mxu0 %v526_v36  ;;  %v494_v50 = vld [vmem:[%s2707_s8] sm:$0xff]  ;;  %803 = vperm.xlu1 %2237, %v496_v49   ;;  %v530_v51 = vpack.c.bf16 %v432_v48, %v431_v47  ;;  %v433_v52 = vld [vmem:[#allocation2 + $0x50] sm:$0xff]  ;;  %v434_v53 = vld [vmem:[#allocation2 + $0x58] sm:$0xff] }
  0x72   : > { %2079 = vmatprep.subr.bf16.mxu0 %v527_v39  ;;  %793 = vperm.xlu0 %2236, %v494_v50   ;;  %v497_v54 = vld [vmem:[%s2707_s8 + $0x18] sm:$0xff]  ;;  %v495_v55 = vld [vmem:[%s2707_s8 + $0x8] sm:$0xff]  ;;  %v531_v56 = vpack.c.bf16 %v434_v53, %v433_v52  ;;  %v435_v57 = vld [vmem:[#allocation2 + $0x60] sm:$0xff]  ;;  %v1111_v52 = vlaneseq }
  0x73   : > { %v499_v58 = vld [vmem:[%s2707_s8 + $0x28] sm:$0xff]  ;;  %v498_v60 = vld [vmem:[%s2707_s8 + $0x20] sm:$0xff]  ;;  %v437_v62 = vld [vmem:[#allocation2 + $0x70] sm:$0xff] }
  0x74   : > { %v436_v59 = vld [vmem:[#allocation2 + $0x68] sm:$0xff]  ;;  %v438_v63 = vld [vmem:[#allocation2 + $0x78] sm:$0xff]  ;;  %v500_v1 = vld [vmem:[%s2707_s8 + $0x30] sm:$0xff] }
  0x75   : > { %2080 = vmatpush3.bf16.msra.mxu0 %v527_v39  ;;  %808 = vperm.xlu1 %2237, %v497_v54   ;;  %v532_v61 = vpack.c.bf16 %v436_v59, %v435_v57  ;;  %v501_v0 = vld [vmem:[%s2707_s8 + $0x38] sm:$0xff]  ;;  %v533_v2 = vpack.c.bf16 %v438_v63, %v437_v62  ;;  %v503_v3 = vld [vmem:[%s2707_s8 + $0x48] sm:$0xff]  ;;  %v502_v4 = vld [vmem:[%s2707_s8 + $0x40] sm:$0xff]  ;;  %v2771_v54 = vshrl.u32 %v1111_v52, 7 }
  0x76   : > { %2081 = vmatprep.subr.bf16.mxu0 %v528_v43  ;;  %798 = vperm.xlu0 %2236, %v495_v55   ;;  %v505_v5 = vld [vmem:[%s2707_s8 + $0x58] sm:$0xff]  ;;  %v504_v6 = vld [vmem:[%s2707_s8 + $0x50] sm:$0xff]  ;;  %v2239_v7 = vld [vmem:[%s2700_s24 + $0x8] sm:$0xff]  }
  0x77   : > { %v2240_v8 = vld [vmem:[%s2700_s24 + $0x10] sm:$0xff]   ;;  %v507_v9 = vld [vmem:[%s2707_s8 + $0x68] sm:$0xff]  ;;  %v506_v10 = vld [vmem:[%s2707_s8 + $0x60] sm:$0xff]  ;;  %v2781_v59 = vadd.s32 24, %v2771_v54  ;;  %v2784_v62 = vadd.s32 8, %v2771_v54  ;;  %v2787_v63 = vadd.s32 48, %v2771_v54 }
  0x78   : > { %v509_v11 = vld [vmem:[%s2707_s8 + $0x78] sm:$0xff]  ;;  %v508_v12 = vld [vmem:[%s2707_s8 + $0x70] sm:$0xff]  ;;  %v2242_v14 = vld [vmem:[%s2700_s24 + $0x20] sm:$0xff]  }
  0x79   : > { %2082 = vmatpush3.bf16.msra.mxu0 %v528_v43  ;;  %818 = vperm.xlu1 %2237, %v499_v58   ;;  %v2241_v13 = vld [vmem:[%s2700_s24 + $0x18] sm:$0xff]   ;;  %v511_v15 = vld [vmem:[%s2707_s8 + $0x88] sm:$0xff]  ;;  %v510_v16 = vld [vmem:[%s2707_s8 + $0x80] sm:$0xff]  ;;  %v2778_v58 = vadd.s32 16, %v2771_v54 }
  0x7a   : > { %2083 = vmatprep.subr.bf16.mxu0 %v529_v46  ;;  %813 = vperm.xlu0 %2236, %v498_v60   ;;  %v513_v17 = vld [vmem:[%s2707_s8 + $0x98] sm:$0xff]  ;;  %v512_v18 = vld [vmem:[%s2707_s8 + $0x90] sm:$0xff]  ;;  %v2243_v19 = vld [vmem:[%s2700_s24 + $0x28] sm:$0xff]  }
  0x7b   : > { %v2244_v20 = vld [vmem:[%s2700_s24 + $0x30] sm:$0xff]   ;;  %v515_v21 = vld [vmem:[%s2707_s8 + $0xa8] sm:$0xff]  ;;  %v514_v22 = vld [vmem:[%s2707_s8 + $0xa0] sm:$0xff] }
  0x7c   : > { %v517_v23 = vld [vmem:[%s2707_s8 + $0xb8] sm:$0xff]  ;;  %v516_v24 = vld [vmem:[%s2707_s8 + $0xb0] sm:$0xff]  ;;  %v2246_v26 = vld [vmem:[%s2700_s24 + $0x40] sm:$0xff]  }
  0x7d   : > { %2084 = vmatpush3.bf16.msra.mxu0 %v529_v46  ;;  %828 = vperm.xlu1 %2237, %v501_v0   ;;  %v2245_v25 = vld [vmem:[%s2700_s24 + $0x38] sm:$0xff]   ;;  %v519_v27 = vld [vmem:[%s2707_s8 + $0xc8] sm:$0xff]  ;;  %v518_v28 = vld [vmem:[%s2707_s8 + $0xc0] sm:$0xff]  ;;  %v2790_v0 = vadd.s32 32, %v2771_v54 }
  0x7e   : > { %2085 = vmatprep.subr.bf16.mxu0 %v530_v51  ;;  %823 = vperm.xlu0 %2236, %v500_v1   ;;  %v521_v29 = vld [vmem:[%s2707_s8 + $0xd8] sm:$0xff]  ;;  %v520_v30 = vld [vmem:[%s2707_s8 + $0xd0] sm:$0xff]  ;;  %v2247_v31 = vld [vmem:[%s2700_s24 + $0x48] sm:$0xff]  }
  0x7f   : > { %v2248_v32 = vld [vmem:[%s2700_s24 + $0x50] sm:$0xff]   ;;  %v523_v33 = vld [vmem:[%s2707_s8 + $0xe8] sm:$0xff]  ;;  %v522_v34 = vld [vmem:[%s2707_s8 + $0xe0] sm:$0xff] }
  0x80   : > { %v525_v35 = vld [vmem:[%s2707_s8 + $0xf8] sm:$0xff]  ;;  %v524_v36 = vld [vmem:[%s2707_s8 + $0xf0] sm:$0xff]  ;;  %v2250_v38 = vld [vmem:[%s2700_s24 + $0x60] sm:$0xff]  }
  0x81   : > { %2086 = vmatpush3.bf16.msra.mxu0 %v530_v51  ;;  %838 = vperm.xlu1 %2237, %v503_v3   ;;  %v2249_v37 = vld [vmem:[%s2700_s24 + $0x58] sm:$0xff]   ;;  %v2251_v39 = vld [vmem:[%s2700_s24 + $0x68] sm:$0xff]   ;;  %v2252_v40 = vld [vmem:[%s2700_s24 + $0x70] sm:$0xff]   ;;  %v2793_v3 = vadd.s32 56, %v2771_v54 }
  0x82   : > { %2087 = vmatprep.subr.bf16.mxu0 %v531_v56  ;;  %833 = vperm.xlu0 %2236, %v502_v4   ;;  %v2253_v41 = vld [vmem:[%s2700_s24 + $0x78] sm:$0xff]   ;;  %v2256_v53 = vld [vmem:[%s2768_s6 + $0x4] ss:$8 sps:$4 sm:$0xff]   ;;  %v2796_v4 = vadd.s32 40, %v2771_v54 }
  0x83   : > { %1506 = vmatprep.mubr.bf16.mxu1 %v2256_v53 }
  0x85   : > { %2088 = vmatpush3.bf16.msra.mxu0 %v531_v56  ;;  %848 = vperm.xlu1 %2237, %v505_v5   ;;  %v2799_v5 = vadd.s32 80, %v2771_v54 }
  0x86   : > { %2089 = vmatprep.subr.bf16.mxu0 %v532_v61  ;;  %843 = vperm.xlu0 %2236, %v504_v6  }
  0x89   : > { %2090 = vmatpush3.bf16.msra.mxu0 %v532_v61  ;;  %858 = vperm.xlu1 %2237, %v507_v9  }
  0x8a   : > { %2091 = vmatprep.subr.bf16.mxu0 %v533_v2  ;;  %853 = vperm.xlu0 %2236, %v506_v10   ;;  %v2804_v10 = vadd.s32 64, %v2771_v54 }
  0x8d   : > { %2092 = vmatpush3.bf16.msra.mxu0 %v533_v2  ;;  %868 = vperm.xlu1 %2237, %v509_v11   ;;  %v2807_v11 = vadd.s32 88, %v2771_v54 }
  0x8e   : > { %863 = vperm.xlu0 %2236, %v508_v12  }
  0x90   : > { %2094 = vmatmul.mubr.bf16.vlgmr.msra.gmra.mrb[0].mxu0 %v2239_v7 }
  0x91   : > { %2097 = vmatprep.mubr.bf16.mxu0 %v2240_v8  ;;  %878 = vperm.xlu1 %2237, %v511_v15   ;;  %v2812_v15 = vadd.s32 72, %v2771_v54 }
  0x92   : > { %873 = vperm.xlu0 %2236, %v510_v16  }
  0x95   : > { %888 = vperm.xlu1 %2237, %v513_v17   ;;  %v2815_v17 = vadd.s32 112, %v2771_v54 }
  0x96   : > { %883 = vperm.xlu0 %2236, %v512_v18   ;;  %v2818_v18 = vadd.s32 96, %v2771_v54 }
  0x98   : > { %2098 = vmatmul.mubr.bf16.gmra.mrb[4].mxu0 %v2241_v13 }
  0x99   : > { %2101 = vmatprep.mubr.bf16.mxu0 %v2242_v14  ;;  %898 = vperm.xlu1 %2237, %v515_v21   ;;  %v2824_v21 = vadd.s32 104, %v2771_v54 }
  0x9a   : > { %893 = vperm.xlu0 %2236, %v514_v22  }
  0x9d   : > { %908 = vperm.xlu1 %2237, %v517_v23   ;;  %v2827_v23 = vadd.s32 144, %v2771_v54 }
  0x9e   : > { %903 = vperm.xlu0 %2236, %v516_v24   ;;  %v2830_v24 = vadd.s32 128, %v2771_v54 }
  0xa0   : > { %2102 = vmatmul.mubr.bf16.gmra.mrb[8].mxu0 %v2243_v19 }
  0xa1   : > { %2105 = vmatprep.mubr.bf16.mxu0 %v2244_v20  ;;  %918 = vperm.xlu1 %2237, %v519_v27   ;;  %v2821_v20 = vadd.s32 120, %v2771_v54  ;;  %v2833_v27 = vadd.s32 152, %v2771_v54 }
  0xa2   : > { %913 = vperm.xlu0 %2236, %v518_v28   ;;  %v2836_v28 = vadd.s32 176, %v2771_v54 }
  0xa5   : > { %928 = vperm.xlu1 %2237, %v521_v29   ;;  %v2839_v29 = vadd.s32 136, %v2771_v54 }
  0xa6   : > { %923 = vperm.xlu0 %2236, %v520_v30  }
  0xa8   : > { %2106 = vmatmul.mubr.bf16.gmra.mrb[12].mxu0 %v2245_v25 }
  0xa9   : > { %2109 = vmatprep.mubr.bf16.mxu0 %v2246_v26  ;;  %938 = vperm.xlu1 %2237, %v523_v33  }
  0xaa   : > { %933 = vperm.xlu0 %2236, %v522_v34   ;;  %v2844_v34 = vadd.s32 160, %v2771_v54 }
  0xad   : > { %948 = vperm.xlu1 %2237, %v525_v35   ;;  %v2847_v35 = vadd.s32 184, %v2771_v54 }
  0xae   : > { %943 = vperm.xlu0 %2236, %v524_v36  }
  0xb0   : > { %2110 = vmatmul.mubr.bf16.gmra.mrb[16].mxu0 %v2247_v31 }
  0xb1   : > { %2113 = vmatprep.mubr.bf16.mxu0 %v2248_v32 }
  0xb8   : > { %2114 = vmatmul.mubr.bf16.gmra.mrb[20].mxu0 %v2249_v37 }
  0xb9   : > { %2117 = vmatprep.mubr.bf16.mxu0 %v2250_v38 }
  0xc0   : > { %2118 = vmatmul.mubr.bf16.gmra.mrb[24].mxu0 %v2251_v39 }
  0xc1   : > { %2121 = vmatprep.mubr.bf16.mxu0 %v2252_v40 }
  0xc8   : > { %2122 = vmatmul.mubr.bf16.gmra.mrb[28].mxu0 %v2253_v41  ;;  %v2854_v41 = vadd.s32 168, %v2771_v54 }
  0xf0   : > { %v804_v43 = vpop.permute.xlu1 %803 }
  0xf1   : > { %v794_v42 = vpop.permute.xlu0 %793 }
  0xf4   : > { %v809_v45 = vpop.permute.xlu1 %808 }
  0xf5   : > { %v799_v44 = vpop.permute.xlu0 %798 }
  0xf8   : > { %v2758_v47 = vpop.permute.xlu1 %818 }
  0xf9   : > { %v2756_v46 = vpop.permute.xlu0 %813 }
  0xfc   : > { %v2760_v49 = vpop.permute.xlu1 %828 }
  0xfd   : > { %v824_v48 = vpop.permute.xlu0 %823 }
 0x100   : > { %v2764_v51 = vpop.permute.xlu1 %838 }
 0x101   : > { %v2762_v50 = vpop.permute.xlu0 %833 }
 0x104   : > { %v2775_v56 = vpop.permute.xlu1 %848 }
 0x105   : > { %v2773_v55 = vpop.permute.xlu0 %843 }
 0x108   : > { %v2809_v12 = vpop.permute.xlu1 %858 }
 0x109   : > { %v2801_v6 = vpop.permute.xlu0 %853 }
 0x10c   : > { %v2849_v36 = vpop.permute.xlu1 %868 }
 0x10d   : > { %v2841_v30 = vpop.permute.xlu0 %863 }
 0x163   : > { %v2095_v57 = vpop.f32.mrb[0].mxu0 }
 0x164   : > { %v953_v60 = vadd.f32 %v2095_v57, %v804_v43  ;;  %v664_v61 = vpop.f32.mrb[1].mxu0 }
 0x165   : > { %v951_v1 = vadd.f32 %v794_v42, %v664_v61  ;;  %v2096_v2 = vpop.f32.mrb[2].mxu0 }
 0x166   : > { %v1049_v7 = vxor.u32 2147483647, %v953_v60  ;;  %v954_v8 = vadd.f32 %v2096_v2, %v809_v45  ;;  %v667_v9 = vpop.f32.mrb[3].mxu0  ;;  %vm1017_vm0 = vcmp.ge.s32.totalorder %v953_v60, 0 }
 0x167   : > { %v1047_v13 = vxor.u32 2147483647, %v951_v1  ;;  %v952_v14 = vadd.f32 %v799_v44, %v667_v9  ;;  %vm1015_vm1 = vcmp.ge.s32.totalorder %v951_v1, 0 }
 0x168   : > { %v1050_v16 = vxor.u32 2147483647, %v954_v8  ;;  %vm1018_vm2 = vcmp.ge.s32.totalorder %v954_v8, 0  ;;  %v1081_v22 = vsel %vm1017_vm0, %v953_v60, %v1049_v7  ;;  %v2858_v7 = vpop.permute.xlu0 %873 }
 0x169   : > { %v1048_v19 = vxor.u32 2147483647, %v952_v14  ;;  %vm1016_vm3 = vcmp.ge.s32.totalorder %v952_v14, 0  ;;  %v1079_v25 = vsel %vm1015_vm1, %v951_v1, %v1047_v13  ;;  %v1146_v37 = vand.u32 4294967040, %v1081_v22 }
 0x16a   : > { %v1082_v31 = vsel %vm1018_vm2, %v954_v8, %v1050_v16  ;;  %v1144_v42 = vand.u32 4294967040, %v1079_v25  ;;  %v2864_v13 = vadd.s32 208, %v2771_v54 }
 0x16b   : > { %v2099_v26 = vpop.f32.mrb[4].mxu0  ;;  %v1080_v38 = vsel %vm1016_vm3, %v952_v14, %v1048_v19  ;;  %v2861_v8 = vor.u32 %v1146_v37, %v2778_v58  ;;  %v2866_v14 = vpop.permute.xlu1 %878 }
 0x16c   : > { %v957_v32 = vadd.f32 %v2099_v26, %v824_v48  ;;  %v680_v33 = vpop.f32.mrb[5].mxu0  ;;  %v1147_v48 = vand.u32 4294967040, %v1082_v31  ;;  %v1145_v57 = vand.u32 4294967040, %v1080_v38 }
 0x16d   : > { %v955_v39 = vadd.f32 %v2756_v46, %v680_v33  ;;  %v2100_v40 = vpop.f32.mrb[6].mxu0 }
 0x16e   : > { %vm1021_vm4 = vcmp.ge.s32.totalorder %v957_v32, 0  ;;  %v1053_v43 = vxor.u32 2147483647, %v957_v32  ;;  %v958_v44 = vadd.f32 %v2100_v40, %v2760_v49  ;;  %v683_v45 = vpop.f32.mrb[7].mxu0  ;;  %v2875_v26 = vor.u32 %v1147_v48, %v2781_v59 }
 0x16f   : > { %vm1019_vm5 = vcmp.ge.s32.totalorder %v955_v39, 0  ;;  %v1051_v52 = vxor.u32 2147483647, %v955_v39  ;;  %v956_v53 = vadd.f32 %v2758_v47, %v683_v45  ;;  %v2869_v47 = vor.u32 %v1144_v42, %v2771_v54 }
 0x170   : > { %v1085_v60 = vsel %vm1021_vm4, %v957_v32, %v1053_v43  ;;  %vm1022_vm6 = vcmp.ge.s32.totalorder %v958_v44, 0  ;;  %v1054_v61 = vxor.u32 2147483647, %v958_v44  ;;  %v2882_v37 = vor.u32 %v1145_v57, %v2784_v62  ;;  %v2906_v43 = vpop.permute.xlu1 %888 }
 0x171   : > { %v1150_v46 = vand.u32 4294967040, %v1085_v60  ;;  %v1083_v1 = vsel %vm1019_vm5, %v955_v39, %v1051_v52  ;;  %vm1020_vm7 = vcmp.ge.s32.totalorder %v956_v53, 0  ;;  %v1052_v2 = vxor.u32 2147483647, %v956_v53 }
 0x172   : > { %v1148_v49 = vand.u32 4294967040, %v1083_v1  ;;  %v1086_v9 = vsel %vm1022_vm6, %v958_v44, %v1054_v61  ;;  %v2912_v52 = vadd.s32 192, %v2771_v54 }
 0x173   : > { %v2872_v16 = vor.u32 %v1150_v46, %v2787_v63  ;;  %v1151_v19 = vand.u32 4294967040, %v1086_v9  ;;  %v1084_v22 = vsel %vm1020_vm7, %v956_v53, %v1052_v2  ;;  %v2103_v25 = vpop.f32.mrb[8].mxu0 }
 0x174   : > { %v2878_v58 = vor.u32 %v1148_v49, %v2790_v0  ;;  %v1149_v31 = vand.u32 4294967040, %v1084_v22  ;;  %v961_v32 = vadd.f32 %v2103_v25, %v2773_v55  ;;  %v696_v33 = vpop.f32.mrb[9].mxu0 }
 0x175   : > { %vm1212_vm8 = vcmp.lt.s32.totalorder %v2861_v8, %v2872_v16  ;;  %v2887_v63 = vor.u32 %v1151_v19, %v2793_v3  ;;  %v959_v38 = vadd.f32 %v2762_v50, %v696_v33  ;;  %v2104_v59 = vpop.f32.mrb[10].mxu0  ;;  %v884_v50 = vpop.permute.xlu0 %883  ;;  %v2922_v19 = vadd.s32 200, %v2771_v54 }
 0x176   : > { %v1213_v0 = vsel %vm1212_vm8, %v2861_v8, %v2872_v16  ;;  %vm1208_vm9 = vcmp.lt.s32.totalorder %v2869_v47, %v2878_v58  ;;  %v2895_v55 = vor.u32 %v1149_v31, %v2796_v4  ;;  %vm1025_vm10 = vcmp.ge.s32.totalorder %v961_v32, 0  ;;  %v699_v62 = vpop.f32.mrb[11].mxu0 }
 0x177   : > { %v1209_v39 = vsel %vm1208_vm9, %v2869_v47, %v2878_v58  ;;  %vm1214_vm11 = vcmp.lt.s32.totalorder %v2875_v26, %v2887_v63  ;;  %v1057_v3 = vxor.u32 2147483647, %v961_v32  ;;  %vm1023_vm12 = vcmp.ge.s32.totalorder %v959_v38, 0 }
 0x178   : > { %v1215_v40 = vsel %vm1214_vm11, %v2875_v26, %v2887_v63  ;;  %vm1210_vm13 = vcmp.lt.s32.totalorder %v2882_v37, %v2895_v55  ;;  %v1055_v42 = vxor.u32 2147483647, %v959_v38  ;;  %v962_v4 = vadd.f32 %v2104_v59, %v2775_v56 }
 0x179   : > { %v1211_v44 = vsel %vm1210_vm13, %v2882_v37, %v2895_v55  ;;  %v1089_v45 = vsel %vm1025_vm10, %v961_v32, %v1057_v3  ;;  %v960_v48 = vadd.f32 %v2764_v51, %v699_v62  ;;  %v2915_v56 = vadd.s32 216, %v2771_v54  ;;  %v2931_v62 = vpop.permute.xlu1 %898 }
 0x17a   : > { %v1154_v53 = vand.u32 4294967040, %v1089_v45  ;;  %v1087_v57 = vsel %vm1023_vm12, %v959_v38, %v1055_v42  ;;  %vm1026_vm14 = vcmp.ge.s32.totalorder %v962_v4, 0  ;;  %v1058_v60 = vxor.u32 2147483647, %v962_v4  ;;  %v2928_v38 = vpop.permute.xlu0 %893 }
 0x17b   : > { %v1152_v61 = vand.u32 4294967040, %v1087_v57  ;;  %vm1024_vm15 = vcmp.ge.s32.totalorder %v960_v48, 0  ;;  %v1056_v46 = vxor.u32 2147483647, %v960_v48  ;;  %v2107_v1 = vpop.f32.mrb[12].mxu0 }
 0x17c   : > { %v2918_v2 = vor.u32 %v1154_v53, %v2799_v5  ;;  %v1090_v49 = vsel %vm1026_vm14, %v962_v4, %v1058_v60  ;;  %v965_v51 = vadd.f32 %v2107_v1, %v2841_v30  ;;  %v712_v9 = vpop.f32.mrb[13].mxu0  ;;  %v2948_v60 = vadd.s32 240, %v2771_v54 }
 0x17d   : > { %v2925_v22 = vor.u32 %v1152_v61, %v2804_v10  ;;  %v1155_v25 = vand.u32 4294967040, %v1090_v49  ;;  %v1088_v31 = vsel %vm1024_vm15, %v960_v48, %v1056_v46  ;;  %v963_v32 = vadd.f32 %v2801_v6, %v712_v9  ;;  %v2108_v33 = vpop.f32.mrb[14].mxu0 }
 0x17e   : > { %vm1220_vm0 = vcmp.lt.s32.totalorder %v1213_v0, %v2918_v2  ;;  %v1153_v5 = vand.u32 4294967040, %v1088_v31  ;;  %vm1029_vm1 = vcmp.ge.s32.totalorder %v965_v51, 0  ;;  %v1061_v59 = vxor.u32 2147483647, %v965_v51  ;;  %v715_v30 = vpop.f32.mrb[15].mxu0  ;;  %v904_v1 = vpop.permute.xlu0 %903 }
 0x17f   : > { %v1221_v3 = vsel %vm1220_vm0, %v1213_v0, %v2918_v2  ;;  %vm1216_vm2 = vcmp.lt.s32.totalorder %v1209_v39, %v2925_v22  ;;  %v2936_v10 = vor.u32 %v1155_v25, %v2807_v11  ;;  %vm1027_vm3 = vcmp.ge.s32.totalorder %v963_v32, 0 }
 0x180   : > { %v1217_v6 = vsel %vm1216_vm2, %v1209_v39, %v2925_v22  ;;  %v2940_v42 = vor.u32 %v1153_v5, %v2812_v15  ;;  %v1093_v4 = vsel %vm1029_vm1, %v965_v51, %v1061_v59  ;;  %v1059_v45 = vxor.u32 2147483647, %v963_v32  ;;  %v909_v51 = vpop.permute.xlu1 %908 }
 0x181   : > { %vm1222_vm4 = vcmp.lt.s32.totalorder %v1215_v40, %v2936_v10  ;;  %v1158_v48 = vand.u32 4294967040, %v1093_v4  ;;  %v966_v53 = vadd.f32 %v2108_v33, %v2849_v36  ;;  %v964_v0 = vadd.f32 %v2809_v12, %v715_v30 }
 0x182   : > { %v1223_v57 = vsel %vm1222_vm4, %v1215_v40, %v2936_v10  ;;  %vm1218_vm5 = vcmp.lt.s32.totalorder %v1211_v44, %v2940_v42  ;;  %v1091_v11 = vsel %vm1027_vm3, %v963_v32, %v1059_v45 }
 0x183   : > { %v1219_v15 = vsel %vm1218_vm5, %v1211_v44, %v2940_v42  ;;  %v2952_v39 = vor.u32 %v1158_v48, %v2815_v17  ;;  %v1156_v61 = vand.u32 4294967040, %v1091_v11  ;;  %vm1030_vm6 = vcmp.ge.s32.totalorder %v966_v53, 0  ;;  %v2111_v46 = vpop.f32.mrb[16].mxu0 }
 0x184   : > { %v1062_v36 = vxor.u32 2147483647, %v966_v53  ;;  %vm1028_vm7 = vcmp.ge.s32.totalorder %v964_v0, 0  ;;  %v1060_v12 = vxor.u32 2147483647, %v964_v0  ;;  %v969_v49 = vadd.f32 %v2111_v46, %v884_v50  ;;  %v728_v40 = vpop.f32.mrb[17].mxu0 }
 0x185   : > { %vm1228_vm8 = vcmp.lt.s32.totalorder %v1221_v3, %v2952_v39  ;;  %v2956_v9 = vor.u32 %v1156_v61, %v2818_v18  ;;  %v967_v44 = vadd.f32 %v2858_v7, %v728_v40  ;;  %v2112_v25 = vpop.f32.mrb[18].mxu0  ;;  %v2960_v17 = vadd.s32 224, %v2771_v54 }
 0x186   : > { %v1229_v31 = vsel %vm1228_vm8, %v1221_v3, %v2952_v39  ;;  %v1094_v32 = vsel %vm1030_vm6, %v966_v53, %v1062_v36  ;;  %v1092_v33 = vsel %vm1028_vm7, %v964_v0, %v1060_v12  ;;  %vm1033_vm9 = vcmp.ge.s32.totalorder %v969_v49, 0  ;;  %v731_v5 = vpop.f32.mrb[19].mxu0  ;;  %v914_v0 = vpop.permute.xlu0 %913 }
 0x187   : > { %vm1224_vm10 = vcmp.lt.s32.totalorder %v1217_v6, %v2956_v9  ;;  %v1159_v50 = vand.u32 4294967040, %v1094_v32  ;;  %v1157_v59 = vand.u32 4294967040, %v1092_v33  ;;  %v1065_v30 = vxor.u32 2147483647, %v969_v49  ;;  %v2973_v36 = vpop.permute.xlu1 %918 }
 0x188   : > { %vm1031_vm11 = vcmp.ge.s32.totalorder %v967_v44, 0  ;;  %v1063_v18 = vxor.u32 2147483647, %v967_v44  ;;  %v970_v4 = vadd.f32 %v2112_v25, %v2906_v43  ;;  %v968_v7 = vadd.f32 %v2866_v14, %v731_v5 }
 0x189   : > { %v2967_v45 = vor.u32 %v1159_v50, %v2821_v20  ;;  %v2970_v3 = vor.u32 %v1157_v59, %v2824_v21  ;;  %v1097_v48 = vsel %vm1033_vm9, %v969_v49, %v1065_v30  ;;  %v1225_v53 = vsel %vm1224_vm10, %v1217_v6, %v2956_v9 }
 0x18a   : > { %v1162_v11 = vand.u32 4294967040, %v1097_v48  ;;  %v1095_v61 = vsel %vm1031_vm11, %v967_v44, %v1063_v18  ;;  %vm1034_vm12 = vcmp.ge.s32.totalorder %v970_v4, 0  ;;  %v1066_v46 = vxor.u32 2147483647, %v970_v4 }
 0x18b   : > { %vm1230_vm13 = vcmp.lt.s32.totalorder %v1223_v57, %v2967_v45  ;;  %vm1226_vm14 = vcmp.lt.s32.totalorder %v1219_v15, %v2970_v3  ;;  %v1160_v14 = vand.u32 4294967040, %v1095_v61  ;;  %vm1032_vm15 = vcmp.ge.s32.totalorder %v968_v7, 0  ;;  %v2115_v20 = vpop.f32.mrb[20].mxu0 }
 0x18c   : > { %v1231_v21 = vsel %vm1230_vm13, %v1223_v57, %v2967_v45  ;;  %v2979_v43 = vor.u32 %v1162_v11, %v2827_v23  ;;  %v1098_v6 = vsel %vm1034_vm12, %v970_v4, %v1066_v46  ;;  %v1064_v12 = vxor.u32 2147483647, %v968_v7  ;;  %v744_v49 = vpop.f32.mrb[21].mxu0  ;;  %v929_v4 = vpop.permute.xlu1 %928 }
 0x18d   : > { %v1163_v40 = vand.u32 4294967040, %v1098_v6  ;;  %v973_v44 = vadd.f32 %v2115_v20, %v904_v1  ;;  %v971_v25 = vadd.f32 %v2928_v38, %v744_v49  ;;  %v2116_v32 = vpop.f32.mrb[22].mxu0  ;;  %v2983_v33 = vor.u32 %v1160_v14, %v2830_v24  ;;  %v924_v38 = vpop.permute.xlu0 %923 }
 0x18e   : > { %vm1236_vm0 = vcmp.lt.s32.totalorder %v1229_v31, %v2979_v43  ;;  %v1096_v5 = vsel %vm1032_vm15, %v968_v7, %v1064_v12  ;;  %v974_v50 = vadd.f32 %v2116_v32, %v909_v51  ;;  %v747_v59 = vpop.f32.mrb[23].mxu0  ;;  %v1227_v23 = vsel %vm1226_vm14, %v1219_v15, %v2970_v3 }
 0x18f   : > { %v1237_v57 = vsel %vm1236_vm0, %v1229_v31, %v2979_v43  ;;  %v2991_v30 = vor.u32 %v1163_v40, %v2833_v27  ;;  %v1161_v1 = vand.u32 4294967040, %v1096_v5  ;;  %vm1037_vm1 = vcmp.ge.s32.totalorder %v973_v44, 0 }
 0x190   : > { %v1069_v18 = vxor.u32 2147483647, %v973_v44  ;;  %vm1035_vm2 = vcmp.ge.s32.totalorder %v971_v25, 0  ;;  %v1067_v24 = vxor.u32 2147483647, %v971_v25  ;;  %vm1038_vm3 = vcmp.ge.s32.totalorder %v974_v50, 0 }
 0x191   : > { %vm1238_vm4 = vcmp.lt.s32.totalorder %v1231_v21, %v2991_v30  ;;  %v1070_v51 = vxor.u32 2147483647, %v974_v50  ;;  %v972_v7 = vadd.f32 %v2931_v62, %v747_v59  ;;  %v2996_v15 = vor.u32 %v1161_v1, %v2839_v29  ;;  %v939_v1 = vpop.permute.xlu1 %938 }
 0x192   : > { %v1239_v31 = vsel %vm1238_vm4, %v1231_v21, %v2991_v30  ;;  %v1101_v27 = vsel %vm1037_vm1, %v973_v44, %v1069_v18  ;;  %v1099_v48 = vsel %vm1035_vm2, %v971_v25, %v1067_v24  ;;  %vm1232_vm5 = vcmp.lt.s32.totalorder %v1225_v53, %v2983_v33  ;;  %v934_v25 = vpop.permute.xlu0 %933 }
 0x193   : > { %v1166_v11 = vand.u32 4294967040, %v1101_v27  ;;  %v1164_v61 = vand.u32 4294967040, %v1099_v48  ;;  %v1102_v46 = vsel %vm1038_vm3, %v974_v50, %v1070_v51  ;;  %vm1036_vm6 = vcmp.ge.s32.totalorder %v972_v7, 0  ;;  %v2119_v14 = vpop.f32.mrb[24].mxu0 }
 0x194   : > { %v1167_v20 = vand.u32 4294967040, %v1102_v46  ;;  %v1068_v6 = vxor.u32 2147483647, %v972_v7  ;;  %v977_v12 = vadd.f32 %v2119_v14, %v924_v38  ;;  %v760_v49 = vpop.f32.mrb[25].mxu0  ;;  %v1233_v62 = vsel %vm1232_vm5, %v1225_v53, %v2983_v33 }
 0x195   : > { %v3002_v29 = vor.u32 %v1166_v11, %v2836_v28  ;;  %v3005_v21 = vor.u32 %v1164_v61, %v2844_v34  ;;  %v975_v40 = vadd.f32 %v914_v0, %v760_v49  ;;  %v2120_v44 = vpop.f32.mrb[26].mxu0  ;;  %vm1234_vm7 = vcmp.lt.s32.totalorder %v1227_v23, %v2996_v15 }
 0x196   : > { %v3009_v32 = vor.u32 %v1167_v20, %v2847_v35  ;;  %v1100_v5 = vsel %vm1036_vm6, %v972_v7, %v1068_v6  ;;  %vm1041_vm8 = vcmp.ge.s32.totalorder %v977_v12, 0  ;;  %v1073_v50 = vxor.u32 2147483647, %v977_v12  ;;  %v763_v59 = vpop.f32.mrb[27].mxu0 }
 0x197   : > { %vm1244_vm9 = vcmp.lt.s32.totalorder %v1237_v57, %v3002_v29  ;;  %v1165_v28 = vand.u32 4294967040, %v1100_v5  ;;  %vm1039_vm10 = vcmp.ge.s32.totalorder %v975_v40, 0  ;;  %v1071_v53 = vxor.u32 2147483647, %v975_v40 }
 0x198   : > { %v1245_v34 = vsel %vm1244_vm9, %v1237_v57, %v3002_v29  ;;  %vm1246_vm11 = vcmp.lt.s32.totalorder %v1239_v31, %v3009_v32  ;;  %v1105_v0 = vsel %vm1041_vm8, %v977_v12, %v1073_v50  ;;  %v978_v38 = vadd.f32 %v2120_v44, %v929_v4 }
 0x199   : > { %v1247_v18 = vsel %vm1246_vm11, %v1239_v31, %v3009_v32  ;;  %v1170_v35 = vand.u32 4294967040, %v1105_v0  ;;  %v1103_v24 = vsel %vm1039_vm10, %v975_v40, %v1071_v53  ;;  %v1143_v51 = vadd.s32 248, %v2771_v54  ;;  %v944_v31 = vpop.permute.xlu0 %943 }
 0x19a   : > { %v1168_v7 = vand.u32 4294967040, %v1103_v24  ;;  %vm1042_vm12 = vcmp.ge.s32.totalorder %v978_v38, 0  ;;  %v1074_v27 = vxor.u32 2147483647, %v978_v38  ;;  %v976_v48 = vadd.f32 %v2973_v36, %v763_v59 }
 0x19b   : > { %v3018_v11 = vor.u32 %v1165_v28, %v2854_v41  ;;  %v3021_v57 = vor.u32 %v1170_v35, %v2864_v13  ;;  %v2123_v61 = vpop.f32.mrb[28].mxu0  ;;  %v1235_v4 = vsel %vm1234_vm7, %v1227_v23, %v2996_v15  ;;  %vm1240_vm13 = vcmp.lt.s32.totalorder %v1233_v62, %v3005_v21  ;;  %v949_v41 = vpop.permute.xlu1 %948 }
 0x19c   : > { %v3028_v46 = vor.u32 %v1168_v7, %v2912_v52  ;;  %v1106_v14 = vsel %vm1042_vm12, %v978_v38, %v1074_v27  ;;  %vm1040_vm14 = vcmp.ge.s32.totalorder %v976_v48, 0  ;;  %v1072_v36 = vxor.u32 2147483647, %v976_v48  ;;  %v776_v20 = vpop.f32.mrb[29].mxu0 }
 0x19d   : > { %vm1252_vm15 = vcmp.lt.s32.totalorder %v1245_v34, %v3021_v57  ;;  %v1171_v13 = vand.u32 4294967040, %v1106_v14  ;;  %v981_v6 = vadd.f32 %v2123_v61, %v944_v31  ;;  %v979_v12 = vadd.f32 %v934_v25, %v776_v20  ;;  %v2124_v49 = vpop.f32.mrb[30].mxu0 }
 0x19e   : > { %v1253_v40 = vsel %vm1252_vm15, %v1245_v34, %v3021_v57  ;;  %v1104_v23 = vsel %vm1040_vm14, %v976_v48, %v1072_v36  ;;  %v982_v44 = vadd.f32 %v2124_v49, %v949_v41  ;;  %v779_v5 = vpop.f32.mrb[31].mxu0  ;;  %v1241_v52 = vsel %vm1240_vm13, %v1233_v62, %v3005_v21 }
 0x19f   : > { %v3036_v50 = vor.u32 %v1171_v13, %v2915_v56  ;;  %v1169_v59 = vand.u32 4294967040, %v1104_v23  ;;  %vm1045_vm0 = vcmp.ge.s32.totalorder %v981_v6, 0  ;;  %v1077_v28 = vxor.u32 2147483647, %v981_v6 }
 0x1a0   : > { %vm1043_vm1 = vcmp.ge.s32.totalorder %v979_v12, 0  ;;  %v1075_v53 = vxor.u32 2147483647, %v979_v12  ;;  %vm1046_vm2 = vcmp.ge.s32.totalorder %v982_v44, 0  ;;  %v1078_v25 = vxor.u32 2147483647, %v982_v44 }
 0x1a1   : > { %vm1254_vm3 = vcmp.lt.s32.totalorder %v1247_v18, %v3036_v50  ;;  %v3040_v34 = vor.u32 %v1169_v59, %v2922_v19  ;;  %v1109_v0 = vsel %vm1045_vm0, %v981_v6, %v1077_v28  ;;  %v980_v38 = vadd.f32 %v939_v1, %v779_v5 }
 0x1a2   : > { %v1255_v35 = vsel %vm1254_vm3, %v1247_v18, %v3036_v50  ;;  %v1174_v62 = vand.u32 4294967040, %v1109_v0  ;;  %v1107_v24 = vsel %vm1043_vm1, %v979_v12, %v1075_v53  ;;  %v1110_v56 = vsel %vm1046_vm2, %v982_v44, %v1078_v25  ;;  %v2279_v25 = vld [vmem:[#allocation2 + $0x8] sm:$0xff] }
 0x1a3   : > { %v1172_v7 = vand.u32 4294967040, %v1107_v24  ;;  %v1175_v27 = vand.u32 4294967040, %v1110_v56  ;;  %vm1044_vm4 = vcmp.ge.s32.totalorder %v980_v38, 0  ;;  %v1076_v48 = vxor.u32 2147483647, %v980_v38 }
 0x1a4   : > { %v3044_v61 = vor.u32 %v1174_v62, %v2948_v60  ;;  %v1141_v31 = vadd.s32 232, %v2771_v54  ;;  %vm1242_vm5 = vcmp.lt.s32.totalorder %v1235_v4, %v3018_v11  ;;  %vm1248_vm6 = vcmp.lt.s32.totalorder %v1241_v52, %v3028_v46  ;;  %v1605_v62 = vld [vmem:[#allocation3 + $0x10] sm:$0xff] }
 0x1a5   : > { %v3050_v19 = vor.u32 %v1172_v7, %v2960_v17  ;;  %v3052_v1 = vor.u32 %v1175_v27, %v1143_v51  ;;  %v1108_v18 = vsel %vm1044_vm4, %v980_v38, %v1076_v48  ;;  %v1243_v14 = vsel %vm1242_vm5, %v1235_v4, %v3018_v11  ;;  %v1606_v27 = vld [vmem:[#allocation3 + $0x18] sm:$0xff]  ;;  %v2280_v48 = vld [vmem:[#allocation2 + $0x10] sm:$0xff] }
 0x1a6   : > { %vm1260_vm7 = vcmp.lt.s32.totalorder %v1253_v40, %v3044_v61  ;;  %v1173_v36 = vand.u32 4294967040, %v1108_v18  ;;  %v1249_v60 = vsel %vm1248_vm6, %v1241_v52, %v3028_v46  ;;  %vm1250_vm8 = vcmp.lt.s32.totalorder %v1243_v14, %v3040_v34 }
 0x1a7   : > { %v1261_v54 = vsel %vm1260_vm7, %v1253_v40, %v3044_v61  ;;  %vm1262_vm9 = vcmp.lt.s32.totalorder %v1255_v35, %v3052_v1  ;;  %v1251_v20 = vsel %vm1250_vm8, %v1243_v14, %v3040_v34  ;;  %vm1256_vm10 = vcmp.lt.s32.totalorder %v1249_v60, %v3050_v19 }
 0x1a8   : > { %v1263_v17 = vsel %vm1262_vm9, %v1255_v35, %v3052_v1  ;;  %v3063_v51 = vor.u32 %v1173_v36, %v1141_v31  ;;  %v1257_v4 = vsel %vm1256_vm10, %v1249_v60, %v3050_v19  ;;  %v2475_v28 = vmov 1.0|1.0  }
 0x1a9   : > { %vm1266_vm11 = vcmp.lt.s32.totalorder %v1261_v54, %v1263_v17 }
 0x1aa   : > { %v1267_v41 = vsel %vm1266_vm11, %v1261_v54, %v1263_v17  ;;  %vm1258_vm12 = vcmp.lt.s32.totalorder %v1251_v20, %v3063_v51  ;;  %v1607_v54 = vld [vmem:[#allocation3 + $0x20] sm:$0xff] }
 0x1ab   : > { %v1259_v13 = vsel %vm1258_vm12, %v1251_v20, %v3063_v51 }
 0x1ac   : > { %vm1264_vm13 = vcmp.lt.s32.totalorder %v1257_v4, %v1259_v13 }
 0x1ad   : > { %v1265_v6 = vsel %vm1264_vm13, %v1257_v4, %v1259_v13  ;;  %v1608_v4 = vld [vmem:[#allocation3 + $0x28] sm:$0xff] }
 0x1ae   : > { %vm1268_vm14 = vcmp.lt.s32.totalorder %v1265_v6, %v1267_v41 }
 0x1af   : > { %v1269_v12 = vsel %vm1268_vm14, %v1265_v6, %v1267_v41  ;;  %v2282_v41 = vld [vmem:[#allocation2 + $0x20] sm:$0xff] }
 0x1b0   : > { %v1270_v49 = vrot.slane %v1269_v12, 4 }
 0x1b2   : > { %vm1271_vm15 = vcmp.lt.s32.totalorder %v1269_v12, %v1270_v49 }
 0x1b3   : > { %v1272_v40 = vsel %vm1271_vm15, %v1269_v12, %v1270_v49  ;;  %v2283_v49 = vld [vmem:[#allocation2 + $0x28] sm:$0xff] }
 0x1b4   : > { %v1273_v23 = vrot.slane %v1272_v40, 2 }
 0x1b6   : > { %vm1274_vm0 = vcmp.lt.s32.totalorder %v1272_v40, %v1273_v23 }
 0x1b7   : > { %v1275_v44 = vsel %vm1274_vm0, %v1272_v40, %v1273_v23 }
 0x1b8   : > { %v1276_v5 = vrot.slane %v1275_v44, 1 }
 0x1ba   : > { %vm1277_vm1 = vcmp.lt.s32.totalorder %v1275_v44, %v1276_v5 }
 0x1bb   : > { %v1278_v52 = vsel %vm1277_vm1, %v1275_v44, %v1276_v5 }
 0x1bc   : > { %v1279_v59 = vand.u32 255, %v1278_v52  ;;  %vm1298_vm2 = vcmp.eq.s32.totalorder %v2983_v33, %v1278_v52  ;;  %vm1299_vm3 = vcmp.eq.s32.totalorder %v2996_v15, %v1278_v52  ;;  %vm1282_vm4 = vcmp.eq.s32.totalorder %v2869_v47, %v1278_v52  ;;  %v1603_v15 = vld [vmem:[#allocation3] sm:$0xff] }
 0x1bd   : > { %vm1962_vm5 = vmpackc.low %vm1299_vm3, %vm1298_vm2  ;;  %vm1283_vm6 = vcmp.eq.s32.totalorder %v2882_v37, %v1278_v52  ;;  %vm1300_vm7 = vcmp.eq.s32.totalorder %v2979_v43, %v1278_v52  ;;  %vm1301_vm8 = vcmp.eq.s32.totalorder %v2991_v30, %v1278_v52  ;;  %vm1284_vm9 = vcmp.eq.s32.totalorder %v2861_v8, %v1278_v52  ;;  %v2260_v37 = vld [vmem:[%s2768_s6 + $0x24] ss:$8 sps:$4 sm:$0xff]   ;;  %v2277_v43 = vld [vmem:[%s2768_s6 + $0x70] ss:$8 sps:$4 sm:$0xff]  }
 0x1be   : > { %1281 = vst [vmem:[%s1280_s9] sm:$0x1] %v1279_v59  ;;  %2013 = vmatprep.subr.msk.bf16.mxu1 %vm1962_vm5, %v2475_v28  ;;  %vm1946_vm10 = vmpackc.low %vm1283_vm6, %vm1282_vm4  ;;  %vm1285_vm11 = vcmp.eq.s32.totalorder %v2875_v26, %v1278_v52  ;;  %vm1302_vm12 = vcmp.eq.s32.totalorder %v3005_v21, %v1278_v52  ;;  %vm1303_vm13 = vcmp.eq.s32.totalorder %v3018_v11, %v1278_v52  ;;  %v2257_v26 = vld [vmem:[%s2768_s6 + $0x14] ss:$8 sps:$4 sm:$0xff]   ;;  %v1604_v11 = vld [vmem:[#allocation3 + $0x8] sm:$0xff] }
 0x1bf   : > { %2014 = vmatpush3.bf16.msk.msra.mxu1 %vm1946_vm10, %v2475_v28  ;;  %vm1964_vm15 = vmpackc.low %vm1301_vm8, %vm1300_vm7  ;;  %vm1287_vm0 = vcmp.eq.s32.totalorder %v2895_v55, %v1278_v52  ;;  %vm1304_vm1 = vcmp.eq.s32.totalorder %v3002_v29, %v1278_v52  ;;  %vm1305_vm2 = vcmp.eq.s32.totalorder %v3009_v32, %v1278_v52  ;;  %vm1288_vm3 = vcmp.eq.s32.totalorder %v2872_v16, %v1278_v52  ;;  %v2254_v16 = vld [vmem:[%s2768_s6] ss:$8 sps:$4 sm:$0xff]   ;;  %v2263_v55 = vld [vmem:[%s2768_s6 + $0x34] ss:$8 sps:$4 sm:$0xff]  }
 0x1c0   : > { %2015 = vmatprep.subr.msk.bf16.mxu1 %vm1964_vm15, %v2475_v28  ;;  %vm1948_vm4 = vmpackc.low %vm1285_vm11, %vm1284_vm9  ;;  %vm1289_vm5 = vcmp.eq.s32.totalorder %v2887_v63, %v1278_v52  ;;  %vm1290_vm7 = vcmp.eq.s32.totalorder %v2925_v22, %v1278_v52  ;;  %vm3314_vm6 = vcmp.eq.s32.totalorder %v2878_v58, %v1278_v52  ;;  %vm1295_vm9 = vcmp.eq.s32.totalorder %v2970_v3, %v1278_v52  ;;  %v2259_v58 = vld [vmem:[%s2768_s6 + $0x10] ss:$8 sps:$4 sm:$0xff]   ;;  %v2262_v63 = vld [vmem:[%s2768_s6 + $0x20] ss:$8 sps:$4 sm:$0xff]  }
 0x1c1   : > { %vm3093_vm8 = vmpackc.low %vm1303_vm13, %vm1302_vm12  ;;  %vm1297_vm15 = vcmp.eq.s32.totalorder %v2967_v45, %v1278_v52  ;;  %vm3321_vm13 = vcmp.eq.s32.totalorder %v3036_v50, %v1278_v52  ;;  %v2266_v22 = vld [vmem:[%s2768_s6 + $0x44] ss:$8 sps:$4 sm:$0xff]   ;;  %v2274_v45 = vld [vmem:[%s2768_s6 + $0x60] ss:$8 sps:$4 sm:$0xff]  }
 0x1c2   : > { %vm3105_vm14 = vmpackc.low %vm1287_vm0, %vm3314_vm6  ;;  %vm1313_vm6 = vcmp.eq.s32.totalorder %v3052_v1, %v1278_v52  ;;  %vm3319_vm0 = vcmp.eq.s32.totalorder %v2940_v42, %v1278_v52  ;;  %v2269_v42 = vld [vmem:[%s2768_s6 + $0x54] ss:$8 sps:$4 sm:$0xff]  }
 0x1c3   : > { %2016 = vmatpush3.bf16.msk.msra.mxu1 %vm1948_vm4, %v2475_v28  ;;  %vm1968_vm11 = vmpackc.low %vm1305_vm2, %vm1304_vm1  ;;  %vm3317_vm1 = vcmp.eq.s32.totalorder %v3028_v46, %v1278_v52  ;;  %vm3318_vm2 = vcmp.eq.s32.totalorder %v3040_v34, %v1278_v52  ;;  %v2275_v3 = vld [vmem:[%s2768_s6 + $0x74] ss:$8 sps:$4 sm:$0xff]  }
 0x1c4   : > { %2017 = vmatprep.subr.msk.bf16.mxu1 %vm3093_vm8, %v2475_v28  ;;  %vm1952_vm4 = vmpackc.low %vm1289_vm5, %vm1288_vm3  ;;  %vm3320_vm8 = vcmp.eq.s32.totalorder %v3021_v57, %v1278_v52  ;;  %vm3322_vm5 = vcmp.eq.s32.totalorder %v2918_v2, %v1278_v52  ;;  %v2265_v2 = vld [vmem:[%s2768_s6 + $0x30] ss:$8 sps:$4 sm:$0xff]   ;;  %v2278_v57 = vld [vmem:[#allocation2] sm:$0xff] }
 0x1c5   : > { %vm1970_vm10 = vmpackc.low %vm3318_vm2, %vm3317_vm1  ;;  %vm3323_vm1 = vcmp.eq.s32.totalorder %v2936_v10, %v1278_v52  ;;  %v2268_v10 = vld [vmem:[%s2768_s6 + $0x40] ss:$8 sps:$4 sm:$0xff]   ;;  %v2281_v1 = vld [vmem:[#allocation2 + $0x18] sm:$0xff] }
 0x1c6   : > { %vm1954_vm12 = vmpackc.low %vm3319_vm0, %vm1290_vm7  ;;  %vm3324_vm0 = vcmp.eq.s32.totalorder %v3050_v19, %v1278_v52  ;;  %vm3325_vm7 = vcmp.eq.s32.totalorder %v3063_v51, %v1278_v52  ;;  %v1610_v8 = vld [vmem:[#allocation3 + $0x38] sm:$0xff] }
 0x1c7   : > { %2018 = vmatpush3.bf16.msk.msra.mxu1 %vm3105_vm14, %v2475_v28  ;;  %vm1972_vm3 = vmpackc.low %vm3321_vm13, %vm3320_vm8  ;;  %vm3326_vm8 = vcmp.eq.s32.totalorder %v2956_v9, %v1278_v52  ;;  %v2272_v9 = vld [vmem:[%s2768_s6 + $0x64] ss:$8 sps:$4 sm:$0xff]  }
 0x1c8   : > { %2019 = vmatprep.subr.msk.bf16.mxu1 %vm1968_vm11, %v2475_v28  ;;  %vm1956_vm2 = vmpackc.low %vm3323_vm1, %vm3322_vm5  ;;  %vm3327_vm11 = vcmp.eq.s32.totalorder %v3044_v61, %v1278_v52  ;;  %vm3328_vm5 = vcmp.eq.s32.totalorder %v2952_v39, %v1278_v52  ;;  %v2271_v39 = vld [vmem:[%s2768_s6 + $0x50] ss:$8 sps:$4 sm:$0xff]  }
 0x1c9   : > { %vm1974_vm14 = vmpackc.low %vm3325_vm7, %vm3324_vm0  ;;  %v1609_v52 = vld [vmem:[#allocation3 + $0x30] sm:$0xff] }
 0x1ca   : > { %vm1958_vm13 = vmpackc.low %vm1295_vm9, %vm3326_vm8 }
 0x1cb   : > { %2020 = vmatpush3.bf16.msk.msra.mxu1 %vm1952_vm4, %v2475_v28  ;;  %vm1976_vm1 = vmpackc.low %vm1313_vm6, %vm3327_vm11 }
 0x1cc   : > { %2021 = vmatprep.subr.msk.bf16.mxu1 %vm1970_vm10, %v2475_v28  ;;  %vm1960_vm0 = vmpackc.low %vm1297_vm15, %vm3328_vm5 }
 0x1cf   : > { %2022 = vmatpush3.bf16.msk.msra.mxu1 %vm1954_vm12, %v2475_v28 }
 0x1d0   : > { %2023 = vmatprep.subr.msk.bf16.mxu1 %vm1972_vm3, %v2475_v28 }
 0x1d3   : > { %2024 = vmatpush3.bf16.msk.msra.mxu1 %vm1956_vm2, %v2475_v28 }
 0x1d4   : > { %2025 = vmatprep.subr.msk.bf16.mxu1 %vm1974_vm14, %v2475_v28 }
 0x1d7   : > { %2026 = vmatpush3.bf16.msk.msra.mxu1 %vm1958_vm13, %v2475_v28 }
 0x1d8   : > { %2027 = vmatprep.subr.msk.bf16.mxu1 %vm1976_vm1, %v2475_v28 }
 0x1db   : > { %2028 = vmatpush3.bf16.msk.msra.mxu1 %vm1960_vm0, %v2475_v28 }
 0x1de   : > { %1507 = vmatmul.mubr.bf16.vlgmr.msra.gmra.mrb[0].mxu1 %v2254_v16  ;;  %v2284_v16 = vld [vmem:[#allocation2 + $0x30] sm:$0xff] }
 0x1df   : > { %1514 = vmatprep.mubr.bf16.mxu1 %v2257_v26 }
 0x1e6   : > { %1515 = vmatmul.mubr.bf16.gmra.mrb[4].mxu1 %v2259_v58 }
 0x1e7   : > { %1522 = vmatprep.mubr.bf16.mxu1 %v2260_v37 }
 0x1ee   : > { %1523 = vmatmul.mubr.bf16.gmra.mrb[8].mxu1 %v2262_v63  ;;  %v2285_v63 = vld [vmem:[#allocation2 + $0x38] sm:$0xff] }
 0x1ef   : > { %1530 = vmatprep.mubr.bf16.mxu1 %v2263_v55 }
 0x1f6   : > { %1531 = vmatmul.mubr.bf16.gmra.mrb[12].mxu1 %v2265_v2 }
 0x1f7   : > { %1538 = vmatprep.mubr.bf16.mxu1 %v2266_v22 }
 0x1fe   : > { %1539 = vmatmul.mubr.bf16.gmra.mrb[16].mxu1 %v2268_v10 }
 0x1ff   : > { %1546 = vmatprep.mubr.bf16.mxu1 %v2269_v42  ;;  %v1611_v42 = vld [vmem:[#allocation3 + $0x40] sm:$0xff] }
 0x206   : > { %1547 = vmatmul.mubr.bf16.gmra.mrb[20].mxu1 %v2271_v39 }
 0x207   : > { %1554 = vmatprep.mubr.bf16.mxu1 %v2272_v9 }
 0x20e   : > { %1555 = vmatmul.mubr.bf16.gmra.mrb[24].mxu1 %v2274_v45 }
 0x20f   : > { %1562 = vmatprep.mubr.bf16.mxu1 %v2275_v3  ;;  %v1612_v3 = vld [vmem:[#allocation3 + $0x48] sm:$0xff] }
 0x216   : > { %1563 = vmatmul.mubr.bf16.gmra.mrb[28].mxu1 %v2277_v43  ;;  %v2286_v43 = vld [vmem:[#allocation2 + $0x40] sm:$0xff] }
 0x2b1   : > { %v2029_v33 = vpop.f32.mrb[0].mxu1 }
 0x2b2   : > { %v2030_v30 = vpop.f32.mrb[1].mxu1 }
 0x2b3   : > { %v2031_v29 = vadd.f32 %v2030_v30, %v2029_v33  ;;  %v2032_v21 = vpop.f32.mrb[2].mxu1 }
 0x2b4   : > { %v2033_v32 = vpop.f32.mrb[3].mxu1 }
 0x2b5   : > { %v1571_v46 = vsub.f32 %v2278_v57, %v2031_v29  ;;  %v1619_v50 = vadd.f32 %v2031_v29, %v1603_v15  ;;  %v2034_v53 = vadd.f32 %v2033_v32, %v2032_v21  ;;  %v2287_v29 = vld [vmem:[#allocation2 + $0x48] sm:$0xff] }
 0x2b7   : > { %1587 = vst [vmem:[#allocation2] sm:$0xff] %v1571_v46  ;;  %1635 = vst [vmem:[#allocation3] sm:$0xff] %v1619_v50  ;;  %v1572_v34 = vsub.f32 %v2279_v25, %v2034_v53  ;;  %v1620_v0 = vadd.f32 %v2034_v53, %v1604_v11  ;;  %v1613_v46 = vld [vmem:[#allocation3 + $0x50] sm:$0xff] }
 0x2b9   : > { %1588 = vst [vmem:[#allocation2 + $0x8] sm:$0xff] %v1572_v34  ;;  %1636 = vst [vmem:[#allocation3 + $0x8] sm:$0xff] %v1620_v0  ;;  %v2035_v38 = vpop.f32.mrb[4].mxu1  ;;  %v1614_v34 = vld [vmem:[#allocation3 + $0x58] sm:$0xff]  ;;  %v2288_v0 = vld [vmem:[#allocation2 + $0x50] sm:$0xff] }
 0x2ba   : > { %v2036_v35 = vpop.f32.mrb[5].mxu1 }
 0x2bb   : > { %v2037_v24 = vadd.f32 %v2036_v35, %v2035_v38  ;;  %v2038_v56 = vpop.f32.mrb[6].mxu1 }
 0x2bc   : > { %v2039_v7 = vpop.f32.mrb[7].mxu1 }
 0x2bd   : > { %v1573_v61 = vsub.f32 %v2280_v48, %v2037_v24  ;;  %v1621_v31 = vadd.f32 %v2037_v24, %v1605_v62  ;;  %v2040_v19 = vadd.f32 %v2039_v7, %v2038_v56  ;;  %v2289_v24 = vld [vmem:[#allocation2 + $0x58] sm:$0xff] }
 0x2bf   : > { %1589 = vst [vmem:[#allocation2 + $0x10] sm:$0xff] %v1573_v61  ;;  %1637 = vst [vmem:[#allocation3 + $0x10] sm:$0xff] %v1621_v31  ;;  %v1574_v18 = vsub.f32 %v2281_v1, %v2040_v19  ;;  %v1622_v14 = vadd.f32 %v2040_v19, %v1606_v27  ;;  %v1615_v61 = vld [vmem:[#allocation3 + $0x60] sm:$0xff] }
 0x2c1   : > { %1590 = vst [vmem:[#allocation2 + $0x18] sm:$0xff] %v1574_v18  ;;  %1638 = vst [vmem:[#allocation3 + $0x18] sm:$0xff] %v1622_v14  ;;  %v2041_v36 = vpop.f32.mrb[8].mxu1  ;;  %v1616_v18 = vld [vmem:[#allocation3 + $0x68] sm:$0xff]  ;;  %v2290_v14 = vld [vmem:[#allocation2 + $0x60] sm:$0xff] }
 0x2c2   : > { %v2042_v60 = vpop.f32.mrb[9].mxu1 }
 0x2c3   : > { %v2043_v20 = vadd.f32 %v2042_v60, %v2041_v36  ;;  %v2044_v17 = vpop.f32.mrb[10].mxu1 }
 0x2c4   : > { %v2045_v51 = vpop.f32.mrb[11].mxu1 }
 0x2c5   : > { %v1575_v13 = vsub.f32 %v2282_v41, %v2043_v20  ;;  %v1623_v6 = vadd.f32 %v2043_v20, %v1607_v54  ;;  %v2046_v12 = vadd.f32 %v2045_v51, %v2044_v17  ;;  %v2291_v20 = vld [vmem:[#allocation2 + $0x68] sm:$0xff] }
 0x2c7   : > { %1591 = vst [vmem:[#allocation2 + $0x20] sm:$0xff] %v1575_v13  ;;  %1639 = vst [vmem:[#allocation3 + $0x20] sm:$0xff] %v1623_v6  ;;  %v1576_v40 = vsub.f32 %v2283_v49, %v2046_v12  ;;  %v1624_v23 = vadd.f32 %v2046_v12, %v1608_v4  ;;  %v1617_v13 = vld [vmem:[#allocation3 + $0x70] sm:$0xff] }
 0x2c9   : > { %1592 = vst [vmem:[#allocation2 + $0x28] sm:$0xff] %v1576_v40  ;;  %1640 = vst [vmem:[#allocation3 + $0x28] sm:$0xff] %v1624_v23  ;;  %v2047_v44 = vpop.f32.mrb[12].mxu1  ;;  %v1618_v40 = vld [vmem:[#allocation3 + $0x78] sm:$0xff]  ;;  %v2292_v23 = vld [vmem:[#allocation2 + $0x70] sm:$0xff] }
 0x2ca   : > { %v2048_v5 = vpop.f32.mrb[13].mxu1 }
 0x2cb   : > { %v2049_v59 = vadd.f32 %v2048_v5, %v2047_v44  ;;  %v2050_v28 = vpop.f32.mrb[14].mxu1 }
 0x2cc   : > { %v2051_v47 = vpop.f32.mrb[15].mxu1 }
 0x2cd   : > { %v1577_v26 = vsub.f32 %v2284_v16, %v2049_v59  ;;  %v1625_v58 = vadd.f32 %v2049_v59, %v1609_v52  ;;  %v2052_v37 = vadd.f32 %v2051_v47, %v2050_v28  ;;  %v2293_v59 = vld [vmem:[#allocation2 + $0x78] sm:$0xff]  ;;  %v1656_v16 = vld [vmem:[#allocation3 + $0x8] sm:$0xff] (!%p1978_p13) }
 0x2ce   : > { %1672 = vst [vmem:[%s2673_s12 + $0x8] sm:$0xff] (!%p1978_p13), %v1656_v16 }
 0x2cf   : > { %1593 = vst [vmem:[#allocation2 + $0x30] sm:$0xff] %v1577_v26  ;;  %1641 = vst [vmem:[#allocation3 + $0x30] sm:$0xff] %v1625_v58  ;;  %v1578_v55 = vsub.f32 %v2285_v63, %v2052_v37  ;;  %v1626_v2 = vadd.f32 %v2052_v37, %v1610_v8  ;;  %v1655_v8 = vld [vmem:[#allocation3] sm:$0xff] (!%p1978_p13)  ;;  %v1657_v26 = vld [vmem:[#allocation3 + $0x10] sm:$0xff] (!%p1978_p13) }
 0x2d0   : > { %1671 = vst [vmem:[%s2673_s12] sm:$0xff] (!%p1978_p13), %v1655_v8  ;;  %1673 = vst [vmem:[%s2673_s12 + $0x10] sm:$0xff] (!%p1978_p13), %v1657_v26  ;;  %v1658_v58 = vld [vmem:[#allocation3 + $0x18] sm:$0xff] (!%p1978_p13)  ;;  %v1659_v37 = vld [vmem:[#allocation3 + $0x20] sm:$0xff] (!%p1978_p13) }
 0x2d1   : > { %1594 = vst [vmem:[#allocation2 + $0x38] sm:$0xff] %v1578_v55  ;;  %1642 = vst [vmem:[#allocation3 + $0x38] sm:$0xff] %v1626_v2  ;;  %v2053_v22 = vpop.f32.mrb[16].mxu1  ;;  %v1660_v63 = vld [vmem:[#allocation3 + $0x28] sm:$0xff] (!%p1978_p13) }
 0x2d2   : > { %v2054_v10 = vpop.f32.mrb[17].mxu1  ;;  %1674 = vst [vmem:[%s2673_s12 + $0x18] sm:$0xff] (!%p1978_p13), %v1658_v58  ;;  %1675 = vst [vmem:[%s2673_s12 + $0x20] sm:$0xff] (!%p1978_p13), %v1659_v37 }
 0x2d3   : > { %v2055_v39 = vadd.f32 %v2054_v10, %v2053_v22  ;;  %v2056_v9 = vpop.f32.mrb[18].mxu1  ;;  %1676 = vst [vmem:[%s2673_s12 + $0x28] sm:$0xff] (!%p1978_p13), %v1660_v63 }
 0x2d4   : > { %v2057_v45 = vpop.f32.mrb[19].mxu1 }
 0x2d5   : > { %v1579_v33 = vsub.f32 %v2286_v43, %v2055_v39  ;;  %v1627_v30 = vadd.f32 %v2055_v39, %v1611_v42  ;;  %v2058_v15 = vadd.f32 %v2057_v45, %v2056_v9 }
 0x2d6   : > { %v1661_v55 = vld [vmem:[#allocation3 + $0x30] sm:$0xff] (!%p1978_p13) }
 0x2d7   : > { %1595 = vst [vmem:[#allocation2 + $0x40] sm:$0xff] %v1579_v33  ;;  %1643 = vst [vmem:[#allocation3 + $0x40] sm:$0xff] %v1627_v30  ;;  %v1580_v21 = vsub.f32 %v2287_v29, %v2058_v15  ;;  %v1628_v32 = vadd.f32 %v2058_v15, %v1612_v3 }
 0x2d8   : > { %v1662_v2 = vld [vmem:[#allocation3 + $0x38] sm:$0xff] (!%p1978_p13)  ;;  %1677 = vst [vmem:[%s2673_s12 + $0x30] sm:$0xff] (!%p1978_p13), %v1661_v55 }
 0x2d9   : > { %1596 = vst [vmem:[#allocation2 + $0x48] sm:$0xff] %v1580_v21  ;;  %1644 = vst [vmem:[#allocation3 + $0x48] sm:$0xff] %v1628_v32  ;;  %v2059_v11 = vpop.f32.mrb[20].mxu1 }
 0x2da   : > { %v2060_v57 = vpop.f32.mrb[21].mxu1  ;;  %1678 = vst [vmem:[%s2673_s12 + $0x38] sm:$0xff] (!%p1978_p13), %v1662_v2 }
 0x2db   : > { %v2061_v50 = vadd.f32 %v2060_v57, %v2059_v11  ;;  %v2062_v53 = vpop.f32.mrb[22].mxu1 }
 0x2dc   : > { %v2063_v25 = vpop.f32.mrb[23].mxu1 }
 0x2dd   : > { %v1581_v38 = vsub.f32 %v2288_v0, %v2061_v50  ;;  %v1629_v35 = vadd.f32 %v2061_v50, %v1613_v46  ;;  %v2064_v62 = vadd.f32 %v2063_v25, %v2062_v53 }
 0x2de   : > { %v1663_v22 = vld [vmem:[#allocation3 + $0x40] sm:$0xff] (!%p1978_p13) }
 0x2df   : > { %1597 = vst [vmem:[#allocation2 + $0x50] sm:$0xff] %v1581_v38  ;;  %1645 = vst [vmem:[#allocation3 + $0x50] sm:$0xff] %v1629_v35  ;;  %v1582_v56 = vsub.f32 %v2289_v24, %v2064_v62  ;;  %v1630_v7 = vadd.f32 %v2064_v62, %v1614_v34 }
 0x2e0   : > { %1679 = vst [vmem:[%s2673_s12 + $0x40] sm:$0xff] (!%p1978_p13), %v1663_v22  ;;  %v1664_v10 = vld [vmem:[#allocation3 + $0x48] sm:$0xff] (!%p1978_p13) }
 0x2e1   : > { %1598 = vst [vmem:[#allocation2 + $0x58] sm:$0xff] %v1582_v56  ;;  %1646 = vst [vmem:[#allocation3 + $0x58] sm:$0xff] %v1630_v7  ;;  %v2065_v27 = vpop.f32.mrb[24].mxu1 }
 0x2e2   : > { %v2066_v48 = vpop.f32.mrb[25].mxu1  ;;  %1680 = vst [vmem:[%s2673_s12 + $0x48] sm:$0xff] (!%p1978_p13), %v1664_v10 }
 0x2e3   : > { %v2067_v31 = vadd.f32 %v2066_v48, %v2065_v27  ;;  %v2068_v19 = vpop.f32.mrb[26].mxu1 }
 0x2e4   : > { %v2069_v1 = vpop.f32.mrb[27].mxu1 }
 0x2e5   : > { %v1583_v36 = vsub.f32 %v2290_v14, %v2067_v31  ;;  %v1631_v60 = vadd.f32 %v2067_v31, %v1615_v61  ;;  %v2070_v54 = vadd.f32 %v2069_v1, %v2068_v19 }
 0x2e6   : > { %v1665_v42 = vld [vmem:[#allocation3 + $0x50] sm:$0xff] (!%p1978_p13) }
 0x2e7   : > { %1599 = vst [vmem:[#allocation2 + $0x60] sm:$0xff] %v1583_v36  ;;  %1647 = vst [vmem:[#allocation3 + $0x60] sm:$0xff] %v1631_v60  ;;  %v1584_v17 = vsub.f32 %v2291_v20, %v2070_v54  ;;  %v1632_v51 = vadd.f32 %v2070_v54, %v1616_v18 }
 0x2e8   : > { %v1666_v39 = vld [vmem:[#allocation3 + $0x58] sm:$0xff] (!%p1978_p13)  ;;  %1681 = vst [vmem:[%s2673_s12 + $0x50] sm:$0xff] (!%p1978_p13), %v1665_v42 }
 0x2e9   : > { %1600 = vst [vmem:[#allocation2 + $0x68] sm:$0xff] %v1584_v17  ;;  %1648 = vst [vmem:[#allocation3 + $0x68] sm:$0xff] %v1632_v51  ;;  %v2071_v4 = vpop.f32.mrb[28].mxu1 }
 0x2ea   : > { %v2072_v41 = vpop.f32.mrb[29].mxu1  ;;  %1682 = vst [vmem:[%s2673_s12 + $0x58] sm:$0xff] (!%p1978_p13), %v1666_v39 }
 0x2eb   : > { %v2073_v6 = vadd.f32 %v2072_v41, %v2071_v4  ;;  %v2074_v12 = vpop.f32.mrb[30].mxu1  ;;  %1654 = sbr.rel (%p1978_p13) target bundleno = 762 (0x2fa), region = 86 }
 0x2ec   : > { %v2075_v49 = vpop.f32.mrb[31].mxu1 }
 0x2ed   : > { %v1585_v44 = vsub.f32 %v2292_v23, %v2073_v6  ;;  %v1633_v5 = vadd.f32 %v2073_v6, %v1617_v13  ;;  %v2076_v52 = vadd.f32 %v2075_v49, %v2074_v12 }
 0x2ee   : > { %v1667_v9 = vld [vmem:[#allocation3 + $0x60] sm:$0xff] (!%p1978_p13) }
 0x2ef   : > { %1601 = vst [vmem:[#allocation2 + $0x70] sm:$0xff] %v1585_v44  ;;  %1649 = vst [vmem:[#allocation3 + $0x70] sm:$0xff] %v1633_v5  ;;  %v1586_v28 = vsub.f32 %v2293_v59, %v2076_v52  ;;  %v1634_v47 = vadd.f32 %v2076_v52, %v1618_v40 }
 0x2f0   : > { %v1668_v45 = vld [vmem:[#allocation3 + $0x68] sm:$0xff] (!%p1978_p13)  ;;  %1683 = vst [vmem:[%s2673_s12 + $0x60] sm:$0xff] (!%p1978_p13), %v1667_v9 }
 0x2f1   : > { %1602 = vst [vmem:[#allocation2 + $0x78] sm:$0xff] %v1586_v28  ;;  %1650 = vst [vmem:[#allocation3 + $0x78] sm:$0xff] %v1634_v47 }
 0x2f2   : > { %1684 = vst [vmem:[%s2673_s12 + $0x68] sm:$0xff] %v1668_v45 }
 0x2f6   : > { %v1669_v3 = vld [vmem:[#allocation3 + $0x70] sm:$0xff] }
 0x2f7   : > { %1685 = vst [vmem:[%s2673_s12 + $0x70] sm:$0xff] %v1669_v3 }
 0x2f8   : > { %v1670_v43 = vld [vmem:[#allocation3 + $0x78] sm:$0xff] }
 0x2f9   : > { %1686 = vst [vmem:[%s2673_s12 + $0x78] sm:$0xff] %v1670_v43 }
 0x2fa PF: > { %s1981_s21 = sshll.u32 %s2452_s23, 5  ;;  %s1707_s7 = sshll.u32 %s2673_s12, 4  ;;  %s3191_s7 = int_to_ptr.vmem [resolvable:$true] %s1707_s7 }
 0x2fb   : > { %s1704_s29 = sadd.s32 %s2448_s22, %s1981_s21  ;;  %s1688_s24 = scalar_lea.sflag [#allocation7], %s2663_s30 }
 0x2fc   : > { %s1982_s18 = sshll.u32 %s1704_s29, 7  ;;  %s2322_s11 = scalar_lea.vmem %s3191_s7, 2048 }
 0x2fd   : > { %s3196_s28 = scalar_lea.hbm %s3285_s4, %s1982_s18  ;;  %p2323_p0 = scmp.ne.s32.totalorder %s3191_s7, %s2322_s11 }
 0x2fe   : > { %p3329_p3 = scmp.ne.s32.totalorder %s3300_s10, 0  ;;  %s2476_s14 = smov [#allocation8]  }
 0x2ff   : > { %s2326_s16 = sshll.u32 %s2476_s14, 4  ;;  %s2327_s16 = int_to_ptr.vmem [resolvable:$false] %s2326_s16 }
 0x300   : > { %p2324_p5 = pnand %p2323_p0, %p3329_p3  ;;  %s2328_s12 = scalar_lea.vmem %s2327_s16, 4096 }
 0x301   : > { %p2329_p10 = scmp.lt.s32.totalorder %s3191_s7, %s2327_s16  ;;  %p2330_p12 = scmp.lt.s32.totalorder %s2328_s12, %s2322_s11 }
 0x302   : > { %p2325_p9 = pneg %p2324_p5 }
 0x303   : > { %p2331_p1 = por %p2330_p12, %p2329_p10 }
 0x305   : > { %p2332_p2 = pnand %p2331_p1, %p2325_p9 }
 0x307   : > { %2335 = shalt.err (!%p2332_p2)
}
 0x308   : > { %s2336_s8 = scalar_lea.hbm %s3196_s28, 2048  ;;  %s2340_s21 = scalar_lea.hbm %s3285_s4, 8192 }
 0x309   : > { %p2337_p4 = scmp.ne.s32.totalorder %s3196_s28, %s2336_s8  ;;  %p2341_p7 = scmp.lt.u32.totalorder %s3196_s28, %s3285_s4 }
 0x30a   : > { %p2342_p11 = scmp.lt.u32.totalorder %s2340_s21, %s2336_s8  ;;  %p2344_p0 = scmp.lt.u32.totalorder %s2336_s8, %s3196_s28 }
 0x30b   : > { %p2338_p8 = pnand %p2337_p4, %p3329_p3 }
 0x30c   : > { %p2343_p13 = por %p2342_p11, %p2341_p7 }
 0x30d   : > { %p2339_p6 = pneg %p2338_p8 }
 0x30e   : > { %p2345_p5 = por %p2344_p0, %p2343_p13 }
 0x310   : > { %p2346_p9 = pnand %p2345_p5, %p2339_p6 }
 0x312   : > { %2349 = shalt.err (!%p2346_p9)
}
 0x313   : > { %s2477_s13 = smov 128   ;;  %s2478_s15 = smov 256  }
 0x314   : > { %s2479_s11 = smov 8   ;;  %s1983_s14 = sshll.u32 %s2452_s23, 1 }
 0x315   : > { %2129 = dma.vmem_to_hbm [thread:$0]  (%p3329_p3), %s3191_s7, 2048, %s3196_s28, %s1688_s24, %s2477_s13, %s2478_s15, %s2479_s11  }
 0x316   : > { %s1721_s16 = sadd.s32 %s2448_s22, %s1983_s14  ;;  %s1725_s12 = sshll.u32 %s2675_s17, 4  ;;  %s3225_s12 = int_to_ptr.vmem [resolvable:$true] %s1725_s12 }
 0x317   : > { %s1984_s8 = sshll.u32 %s1721_s16, 6  ;;  %s1693_s29 = scalar_lea.sflag [#allocation10], %s2663_s30 }
 0x318   : > { %s1723_s21 = scalar_lea.hbm %s3286_s5, %s1984_s8  ;;  %s2350_s18 = scalar_lea.vmem %s3225_s12, 64 }
 0x319   : > { %p2351_p10 = scmp.ne.s32.totalorder %s3225_s12, %s2350_s18  ;;  %s2480_s7 = smov [#allocation9]  }
 0x31a   : > { %s2354_s23 = sshll.u32 %s2480_s7, 4  ;;  %s2355_s23 = int_to_ptr.vmem [resolvable:$false] %s2354_s23 }
 0x31b   : > { %p2352_p12 = pnand %p2351_p10, %p3329_p3  ;;  %s2356_s22 = scalar_lea.vmem %s2355_s23, 128 }
 0x31c   : > { %p2357_p2 = scmp.lt.s32.totalorder %s3225_s12, %s2355_s23  ;;  %p2358_p4 = scmp.lt.s32.totalorder %s2356_s22, %s2350_s18 }
 0x31d   : > { %p2353_p1 = pneg %p2352_p12 }
 0x31e   : > { %p2359_p8 = por %p2358_p4, %p2357_p2 }
 0x320   : > { %p2360_p6 = pnand %p2359_p8, %p2353_p1 }
 0x322   : > { %2363 = shalt.err (!%p2360_p6)
}
 0x323   : > { %s2364_s17 = scalar_lea.hbm %s1723_s21, 64  ;;  %s2368_s24 = scalar_lea.hbm %s3286_s5, 256 }
 0x324   : > { %p2365_p7 = scmp.ne.s32.totalorder %s1723_s21, %s2364_s17  ;;  %p2369_p0 = scmp.lt.u32.totalorder %s1723_s21, %s3286_s5 }
 0x325   : > { %p2370_p5 = scmp.lt.u32.totalorder %s2368_s24, %s2364_s17  ;;  %p2372_p10 = scmp.lt.u32.totalorder %s2364_s17, %s1723_s21 }
 0x326   : > { %p2366_p11 = pnand %p2365_p7, %p3329_p3 }
 0x327   : > { %p2371_p9 = por %p2370_p5, %p2369_p0 }
 0x328   : > { %p2367_p13 = pneg %p2366_p11 }
 0x329   : > { %p2373_p12 = por %p2372_p10, %p2371_p9 }
 0x32b   : > { %p2374_p1 = pnand %p2373_p12, %p2367_p13 }
 0x32d   : > { %2377 = shalt.err (!%p2374_p1)
}
 0x32e   : > { %2130 = dma.vmem_to_hbm [thread:$0]  (%p3329_p3), %s3225_s12, 64, %s1723_s21, %s1693_s29  }
 0x32f PF: > { %s3330_s11 = sld [smem:[#allocation14_spill]]  ;;  %s3331_s14 = sld [smem:[#allocation18_spill]] }
 0x330   : > { %p2146_p2 = scmp.ge.s32.totalorder %s2468_s27, 2 }
 0x335   : > { %s1737_s16 = sand.u32 1, %s3330_s11   ;;  %p3332_p4 = scmp.ne.s32.totalorder %s3331_s14, 0 }
 0x336   : > { %s1738_s8 = scalar_lea.sflag [#allocation7], %s1737_s16 }
 0x337   : > { %p2138_p8 = pnand %p2146_p2, %p3332_p4 }
 0x339   : > { %2423 = dma.done.wait (!%p2138_p8), %s1738_s8, 2048  }
 0x33a   : > { %2425 = vsyncadd (!%p2138_p8), %s1738_s8, 4294965248  ;;  %s1747_s6 = scalar_lea.sflag [#allocation10], %s1737_s16 }
 0x33b   : > { %2427 = dma.done.wait (!%p2138_p8), %s1747_s6, 64  }
 0x33c   : > { %2429 = vsyncadd (!%p2138_p8), %s1747_s6, 4294967232  ;;  %s23_s27 = sadd.s32 1, %s2468_s27   ;;  %s3333_s10 = sld [smem:[#allocation20_spill]] }
 0x33d   : > { %p20_p6 = scmp.ge.s32.totalorder %s23_s27, 18   ;;  %s3334_s21 = sld [smem:[#allocation15_spill]] }
 0x33e   : > { %s3335_s24 = sld [smem:[#allocation16_spill]]  ;;  %s3336_s12 = sld [smem:[#allocation17_spill]] }
 0x33f   : > { %s3337_s9 = sld [smem:[#allocation19_spill]]  ;;  %s3338_s18 = smov %s2436_s19 }
 0x340   : > { %s3339_s19 = smov %s2440_s20  ;;  %s3341_s22 = smov %s2460_s25 }
 0x341   : > { %s3342_s23 = smov %s2464_s26  ;;  %22 = sbr.rel (!%p20_p6) target bundleno = 9 (0x9), region = 148 }
 0x342   : > { %s3340_s20 = smov %s3333_s10 }
 0x344   : > { %s3343_s25 = smov %s3336_s12 }
 0x345   : > { %s3344_s26 = smov %s3337_s9 }
 0x348   :  { %1752 = vsyncpa [#allocation6], 1 }
 0x349   :  { %1754 = vsyncpa [#allocation6 + $0x1], 1 }
 0x34a   :  { %1755 = vsyncpa [#allocation7], 1 }
 0x34b   :  { %1757 = vsyncpa [#allocation7 + $0x1], 1 }
 0x34c   :  { %1758 = vsyncpa [#allocation10], 1 }
 0x34d   :  { %1760 = vsyncpa [#allocation10 + $0x1], 1 }

</bundles_post_ra>
